<compile_context>
chip_gen: v6e
topology: v6e:2x2x1
jax: 0.10.0
libtpu: 0.0.40
codegen_flags: <defaults>
</compile_context>

<pallas_src>
from functools import partial

import jax
import jax.numpy as jnp
from jax.experimental import pallas as pl
from jax.experimental.pallas import tpu as pltpu


def _round_up(x, m):
    return (x + m - 1) // m * m


_TM_CAP = [None]


def _tm_cap():
    """Max batch-tile rows: 128 fills v5e's 4x128^2 MXU; 256 for v6e/v7x."""
    if _TM_CAP[0] is None:
        cap = 128
        try:
            kind = jax.devices()[0].device_kind.lower()
            if "v6" in kind or "v7" in kind:
                cap = 256
        except Exception:
            pass
        _TM_CAP[0] = cap
    return _TM_CAP[0]


# ----------------------------------------------------------------------------
# Fused Pallas kernel: the whole network for one batch tile.
#   x_ref : (TM, 128) f32  (input, zero-padded 11 -> 128)
#   w*    : (K, N)    bf16 (pre-transposed weights; wc = fc3 folded with heads)
#   b*    : (1, N)    f32
#   o_ref : (TM, 256) f32  (all head outputs concatenated, padded 216 -> 256)
# ----------------------------------------------------------------------------
def _fused_qnet_kernel(x_ref, w1_ref, b1_ref, w2_ref, b2_ref, wc_ref, bc_ref,
                       o_ref):
    # Activations stay in VMEM/vregs between layers; only the final packed
    # head output is written back.
    h = x_ref[...]                                                  # (TM, 128)
    h = jnp.dot(h.astype(jnp.bfloat16), w1_ref[...],
                preferred_element_type=jnp.float32) + b1_ref[...]
    h = jnp.maximum(h, 0.0)                                         # relu(fc1)
    h = jnp.dot(h.astype(jnp.bfloat16), w2_ref[...],
                preferred_element_type=jnp.float32) + b2_ref[...]
    h = jnp.maximum(h, 0.0)                                         # relu(fc2)
    y = jnp.dot(h.astype(jnp.bfloat16), wc_ref[...],
                preferred_element_type=jnp.float32) + bc_ref[...]   # fc3+heads
    o_ref[...] = y.astype(o_ref.dtype)


def _const_spec(arr, single_buffer):
    """Full-array BlockSpec with a constant index_map (weights/biases)."""
    nd = arr.ndim
    kwargs = {"pipeline_mode": pl.Buffered(1)} if single_buffer else {}
    return pl.BlockSpec(arr.shape, lambda i, _nd=nd: (0,) * _nd, **kwargs)


@partial(jax.jit, static_argnames=("tm", "single_buffer"))
def _forward_padded(x, w1, b1, w2, b2, wc, bc, *, tm, single_buffer):
    """Pad batch/features, run the fused kernel, return (m, 256) packed heads."""
    m, k_in = x.shape
    k1 = w1.shape[0]
    n_out = wc.shape[1]
    m_pad = _round_up(max(m, tm), tm)
    x_pad = jnp.pad(x.astype(jnp.float32), ((0, m_pad - m), (0, k1 - k_in)))

    y = pl.pallas_call(
        _fused_qnet_kernel,
        out_shape=jax.ShapeDtypeStruct((m_pad, n_out), jnp.float32),
        grid=(m_pad // tm,),
        in_specs=[
            pl.BlockSpec((tm, k1), lambda i: (i, 0)),   # x: tiled over batch
            _const_spec(w1, single_buffer), _const_spec(b1, single_buffer),
            _const_spec(w2, single_buffer), _const_spec(b2, single_buffer),
            _const_spec(wc, single_buffer), _const_spec(bc, single_buffer),
        ],
        out_specs=pl.BlockSpec((tm, n_out), lambda i: (i, 0)),
        compiler_params=pltpu.CompilerParams(
            dimension_semantics=("parallel",)),
    )(x_pad, w1, b1, w2, b2, wc, bc)
    return y[:m]


# ----------------------------------------------------------------------------
# Parameter construction (deterministic, PyTorch-style uniform(-1/sqrt(in)))
# ----------------------------------------------------------------------------
def _init_linear(key, out_features, in_features):
    kw, kb = jax.random.split(key)
    bound = 1.0 / (in_features ** 0.5)
    w = jax.random.uniform(kw, (out_features, in_features), jnp.float32,
                           -bound, bound)
    b = jax.random.uniform(kb, (out_features,), jnp.float32, -bound, bound)
    return w, b


def init_linear_qnet(key, input_size, hidden_size, output_sizes):
    assert hidden_size // 4 == 128, (
        "Linear_QNet hard-codes its output heads as nn.Linear(128, ...), which "
        "requires hidden_size == 512.")
    keys = jax.random.split(key, 3 + sum(output_sizes))
    params = {}
    params["fc1"] = _init_linear(keys[0], hidden_size, input_size)
    params["fc2"] = _init_linear(keys[1], hidden_size // 2, hidden_size)
    params["fc3"] = _init_linear(keys[2], hidden_size // 4, hidden_size // 2)
    k = 3
    heads1, heads2, heads3 = [], [], []
    for _ in range(output_sizes[0]):
        heads1.append(_init_linear(keys[k], 100, 128)); k += 1
    for _ in range(output_sizes[1]):
        heads2.append(_init_linear(keys[k], 7, 128)); k += 1
    for _ in range(output_sizes[2]):
        heads3.append(_init_linear(keys[k], 2, 128)); k += 1
    params["outputs1"] = heads1
    params["outputs2"] = heads2
    params["outputs3"] = heads3
    return params


def pack_params(params, input_size, output_sizes):
    """Pre-transpose to (K, N) bf16, pad K1->128, fold fc3+heads, pad N->256."""
    def t32(w):  # (out, in) -> (in, out) f32
        return jnp.asarray(w, jnp.float32).T

    w1, b1 = params["fc1"]
    w2, b2 = params["fc2"]
    w3, b3 = params["fc3"]
    heads = params["outputs1"] + params["outputs2"] + params["outputs3"]

    assert w3.shape[0] == 128 and all(w.shape[1] == 128 for (w, _) in heads), (
        "output heads hard-code in_features=128 -> hidden_size must be 512")

    # fc1: pad the contraction dim input_size -> 128 (lane alignment).
    k1 = _round_up(input_size, 128)
    w1_t = jnp.zeros((k1, w1.shape[0]), jnp.float32)
    w1_t = w1_t.at[:input_size, :].set(t32(w1))

    # Fold fc3 and ALL heads (no nonlinearity between them) into ONE linear
    # map, computed in f32 then cast to bf16; output cols padded 216 -> 256.
    wh = jnp.concatenate([w for (w, _) in heads], axis=0)        # (216, 128)
    bh = jnp.concatenate([b for (_, b) in heads], axis=0)        # (216,)
    n_heads = wh.shape[0]
    n_pad = _round_up(n_heads, 256)
    wc = t32(w3) @ t32(wh)                                       # (256, 216) f32
    bc = jnp.asarray(b3, jnp.float32) @ t32(wh) + bh             # (216,)
    wc_pad = jnp.zeros((wc.shape[0], n_pad), jnp.float32).at[:, :n_heads].set(wc)
    bc_pad = jnp.zeros((1, n_pad), jnp.float32).at[0, :n_heads].set(bc)

    return {
        "w1": w1_t.astype(jnp.bfloat16),
        "b1": jnp.asarray(b1, jnp.float32).reshape(1, -1),
        "w2": t32(w2).astype(jnp.bfloat16),
        "b2": jnp.asarray(b2, jnp.float32).reshape(1, -1),
        "wc": wc_pad.astype(jnp.bfloat16),
        "bc": bc_pad,
        "counts": tuple(output_sizes),
        "head_dims": (100, 7, 2),
        "input_size": input_size,
    }


# ----------------------------------------------------------------------------
# Forward pass mirroring Linear_QNet.forward
# ----------------------------------------------------------------------------
_SINGLE_BUFFER_OK = [hasattr(pl, "Buffered")]


def _split_heads(y, packed):
    outs = [[], [], []]
    off = 0
    for gi, (count, dim) in enumerate(zip(packed["counts"],
                                          packed["head_dims"])):
        for _ in range(count):
            outs[gi].append(y[:, off:off + dim])
            off += dim
    return outs


def linear_qnet_forward(packed, x):
    tm = min(_tm_cap(), _round_up(max(x.shape[0], 8), 8))
    args = (x, packed["w1"], packed["b1"], packed["w2"], packed["b2"],
            packed["wc"], packed["bc"])
    if _SINGLE_BUFFER_OK[0]:
        try:
            y = _forward_padded(*args, tm=tm, single_buffer=True)
        except Exception:
            # pipeline_mode=pl.Buffered(1) not supported on this jax/Mosaic
            # version; fall back to default double-buffered weight specs.
            _SINGLE_BUFFER_OK[0] = False
            y = _forward_padded(*args, tm=tm, single_buffer=False)
    else:
        y = _forward_padded(*args, tm=tm, single_buffer=False)
    return _split_heads(y, packed)


# ----------------------------------------------------------------------------
# References for the self-test.
# ----------------------------------------------------------------------------
def _ref_forward_matched(packed, x):
    """Pure-jnp reference using the exact packed/folded bf16 weights."""
    k1 = packed["w1"].shape[0]
    xp = jnp.pad(x.astype(jnp.float32), ((0, 0), (0, k1 - x.shape[1])))
    h = jnp.maximum(jnp.dot(xp.astype(jnp.bfloat16), packed["w1"],
                            preferred_element_type=jnp.float32) + packed["b1"], 0.0)
    h = jnp.maximum(jnp.dot(h.astype(jnp.bfloat16), packed["w2"],
                            preferred_element_type=jnp.float32) + packed["b2"], 0.0)
    y = jnp.dot(h.astype(jnp.bfloat16), packed["wc"],
                preferred_element_type=jnp.float32) + packed["bc"]
    return _split_heads(y, packed)


def _ref_forward_f32(params, x):
    """Pure-f32 reference mirroring the PyTorch module semantics."""
    def lin(h, wb, relu=False):
        w, b = wb
        y = h @ jnp.asarray(w, jnp.float32).T + b
        return jnp.maximum(y, 0.0) if relu else y
    h = lin(x, params["fc1"], relu=True)
    h = lin(h, params["fc2"], relu=True)
    h = lin(h, params["fc3"])
    return [[lin(h, wb) for wb in params["outputs1"]],
            [lin(h, wb) for wb in params["outputs2"]],
            [lin(h, wb) for wb in params["outputs3"]]]


if __name__ == "__main__":
    # Small, module-consistent shapes (hidden_size must be 512 so that
    # hidden_size // 4 == 128 matches the hard-coded head input dimension).
    batch = 4
    input_size = 11
    hidden_size = 512
    output_sizes = (2, 2, 1)

    key = jax.random.PRNGKey(0)
    k_params, k_x = jax.random.split(key)
    params = init_linear_qnet(k_params, input_size, hidden_size, output_sizes)
    packed = pack_params(params, input_size, output_sizes)
    x = jax.random.normal(k_x, (batch, input_size), jnp.float32)

    outs = linear_qnet_forward(packed, x)
    outs = jax.block_until_ready(outs)

    expected_dims = (100, 7, 2)
    ref_m = _ref_forward_matched(packed, x)
    ref_f = _ref_forward_f32(params, x)
    for gi in range(3):
        assert len(outs[gi]) == output_sizes[gi]
        for o, rm, rf in zip(outs[gi], ref_m[gi], ref_f[gi]):
            assert o.shape == (batch, expected_dims[gi])
            # Plumbing check: identical numerics path (bf16 operands, f32
            # accumulation, folded fc3+heads) as the kernel.
            assert jnp.allclose(o, rm, atol=2e-3, rtol=2e-3)
            # Semantics check vs the f32 PyTorch-style module (bf16 operands
            # give ~1e-2-scale absolute differences).
            assert jnp.allclose(o, rf, atol=1e-1, rtol=1e-1)

    # TODO(synk): Linear_QNet.save() is file I/O (torch.save) and has no
    # Pallas equivalent; only the forward pass is implemented here.
    # TODO(synk): for a real deployment loop at batch~4, the remaining win is
    # amortizing the per-call weight DMA / launch latency (batch multiple
    # states per call, or keep weights VMEM-resident across calls via a
    # cross-pallas_call semaphore + VMEM-ref future); nothing inside the
    # kernel body matters more at this size.
    print("KERNEL_OK")
</pallas_src>

<mosaic_0001>
module attributes {stable_mosaic.version = 11 : i64} {
  func.func @_fused_qnet_kernel(%arg0: i32, %arg1: memref<8x128xf32, #tpu.memory_space<vmem>>, %arg2: memref<128x512xbf16, #tpu.memory_space<vmem>>, %arg3: memref<1x512xf32, #tpu.memory_space<vmem>>, %arg4: memref<512x256xbf16, #tpu.memory_space<vmem>>, %arg5: memref<1x256xf32, #tpu.memory_space<vmem>>, %arg6: memref<256x256xbf16, #tpu.memory_space<vmem>>, %arg7: memref<1x256xf32, #tpu.memory_space<vmem>>, %arg8: memref<8x256xf32, #tpu.memory_space<vmem>>) attributes {dimension_semantics = [#tpu.dimension_semantics<parallel>], iteration_bounds = array<i64: 1>, scalar_prefetch = 0 : i64, scratch_operands = 0 : i64, tpu.core_type = #tpu.core_type<tc>, window_params = [{transform_indices = @transform_0, window_bounds = array<i64: 8, 128>}, {pipeline_mode = #tpu.pipeline_mode<synchronous>, transform_indices = @transform_1, window_bounds = array<i64: 128, 512>}, {pipeline_mode = #tpu.pipeline_mode<synchronous>, transform_indices = @transform_2, window_bounds = array<i64: 1, 512>}, {pipeline_mode = #tpu.pipeline_mode<synchronous>, transform_indices = @transform_3, window_bounds = array<i64: 512, 256>}, {pipeline_mode = #tpu.pipeline_mode<synchronous>, transform_indices = @transform_4, window_bounds = array<i64: 1, 256>}, {pipeline_mode = #tpu.pipeline_mode<synchronous>, transform_indices = @transform_5, window_bounds = array<i64: 256, 256>}, {pipeline_mode = #tpu.pipeline_mode<synchronous>, transform_indices = @transform_6, window_bounds = array<i64: 1, 256>}, {transform_indices = @transform_7, window_bounds = array<i64: 8, 256>}]} {
    %c0 = arith.constant 0 : index
    %c0_0 = arith.constant 0 : index
    %0 = vector.load %arg1[%c0, %c0_0] : memref<8x128xf32, #tpu.memory_space<vmem>>, vector<8x128xf32>
    %1 = arith.truncf %0 : vector<8x128xf32> to vector<8x128xbf16>
    %c0_1 = arith.constant 0 : index
    %c0_2 = arith.constant 0 : index
    %2 = vector.load %arg2[%c0_1, %c0_2] : memref<128x512xbf16, #tpu.memory_space<vmem>>, vector<128x512xbf16>
    %cst = arith.constant dense<0.000000e+00> : vector<8x512xf32>
    %3 = tpu.matmul %1, %2, %cst {dimension_numbers = #tpu.dot_dimension_numbers<[1], [0], [0], [1], [0, 0, 1, 1], [], []>} : vector<8x128xbf16>, vector<128x512xbf16>, vector<8x512xf32> -> vector<8x512xf32>
    %c0_3 = arith.constant 0 : index
    %c0_4 = arith.constant 0 : index
    %4 = vector.load %arg3[%c0_3, %c0_4] : memref<1x512xf32, #tpu.memory_space<vmem>>, vector<1x512xf32>
    %5 = vector.broadcast %4 : vector<1x512xf32> to vector<8x512xf32>
    %6 = arith.addf %3, %5 : vector<8x512xf32>
    %cst_5 = arith.constant 0.000000e+00 : f32
    %7 = vector.broadcast %cst_5 : f32 to vector<8x512xf32>
    %8 = arith.maximumf %6, %7 : vector<8x512xf32>
    %9 = arith.truncf %8 : vector<8x512xf32> to vector<8x512xbf16>
    %c0_6 = arith.constant 0 : index
    %c0_7 = arith.constant 0 : index
    %10 = vector.load %arg4[%c0_6, %c0_7] : memref<512x256xbf16, #tpu.memory_space<vmem>>, vector<512x256xbf16>
    %cst_8 = arith.constant dense<0.000000e+00> : vector<8x256xf32>
    %11 = tpu.matmul %9, %10, %cst_8 {dimension_numbers = #tpu.dot_dimension_numbers<[1], [0], [0], [1], [0, 0, 1, 1], [], []>} : vector<8x512xbf16>, vector<512x256xbf16>, vector<8x256xf32> -> vector<8x256xf32>
    %c0_9 = arith.constant 0 : index
    %c0_10 = arith.constant 0 : index
    %12 = vector.load %arg5[%c0_9, %c0_10] : memref<1x256xf32, #tpu.memory_space<vmem>>, vector<1x256xf32>
    %13 = vector.broadcast %12 : vector<1x256xf32> to vector<8x256xf32>
    %14 = arith.addf %11, %13 : vector<8x256xf32>
    %cst_11 = arith.constant 0.000000e+00 : f32
    %15 = vector.broadcast %cst_11 : f32 to vector<8x256xf32>
    %16 = arith.maximumf %14, %15 : vector<8x256xf32>
    %17 = arith.truncf %16 : vector<8x256xf32> to vector<8x256xbf16>
    %c0_12 = arith.constant 0 : index
    %c0_13 = arith.constant 0 : index
    %18 = vector.load %arg6[%c0_12, %c0_13] : memref<256x256xbf16, #tpu.memory_space<vmem>>, vector<256x256xbf16>
    %cst_14 = arith.constant dense<0.000000e+00> : vector<8x256xf32>
    %19 = tpu.matmul %17, %18, %cst_14 {dimension_numbers = #tpu.dot_dimension_numbers<[1], [0], [0], [1], [0, 0, 1, 1], [], []>} : vector<8x256xbf16>, vector<256x256xbf16>, vector<8x256xf32> -> vector<8x256xf32>
    %c0_15 = arith.constant 0 : index
    %c0_16 = arith.constant 0 : index
    %20 = vector.load %arg7[%c0_15, %c0_16] : memref<1x256xf32, #tpu.memory_space<vmem>>, vector<1x256xf32>
    %21 = vector.broadcast %20 : vector<1x256xf32> to vector<8x256xf32>
    %22 = arith.addf %19, %21 : vector<8x256xf32>
    %c0_17 = arith.constant 0 : index
    %c0_18 = arith.constant 0 : index
    %23 = vector.load %arg8[%c0_17, %c0_18] : memref<8x256xf32, #tpu.memory_space<vmem>>, vector<8x256xf32>
    tpu.vector_store %arg8[%c0_17, %c0_18], %22 {strides = array<i32>} : memref<8x256xf32, #tpu.memory_space<vmem>>, vector<8x256xf32>,
    return
  }
  func.func @transform_0(%arg0: i32) -> (i32, i32) {
    %c0_i32 = arith.constant 0 : i32
    %c0_i32_0 = arith.constant 0 : i32
    return %arg0, %c0_i32 : i32, i32
  }
  func.func @transform_1(%arg0: i32) -> (i32, i32) {
    %c0_i32 = arith.constant 0 : i32
    %c0_i32_0 = arith.constant 0 : i32
    %c0_i32_1 = arith.constant 0 : i32
    return %c0_i32, %c0_i32_0 : i32, i32
  }
  func.func @transform_2(%arg0: i32) -> (i32, i32) {
    %c0_i32 = arith.constant 0 : i32
    %c0_i32_0 = arith.constant 0 : i32
    %c0_i32_1 = arith.constant 0 : i32
    return %c0_i32, %c0_i32_0 : i32, i32
  }
  func.func @transform_3(%arg0: i32) -> (i32, i32) {
    %c0_i32 = arith.constant 0 : i32
    %c0_i32_0 = arith.constant 0 : i32
    %c0_i32_1 = arith.constant 0 : i32
    return %c0_i32, %c0_i32_0 : i32, i32
  }
  func.func @transform_4(%arg0: i32) -> (i32, i32) {
    %c0_i32 = arith.constant 0 : i32
    %c0_i32_0 = arith.constant 0 : i32
    %c0_i32_1 = arith.constant 0 : i32
    return %c0_i32, %c0_i32_0 : i32, i32
  }
  func.func @transform_5(%arg0: i32) -> (i32, i32) {
    %c0_i32 = arith.constant 0 : i32
    %c0_i32_0 = arith.constant 0 : i32
    %c0_i32_1 = arith.constant 0 : i32
    return %c0_i32, %c0_i32_0 : i32, i32
  }
  func.func @transform_6(%arg0: i32) -> (i32, i32) {
    %c0_i32 = arith.constant 0 : i32
    %c0_i32_0 = arith.constant 0 : i32
    %c0_i32_1 = arith.constant 0 : i32
    return %c0_i32, %c0_i32_0 : i32, i32
  }
  func.func @transform_7(%arg0: i32) -> (i32, i32) {
    %c0_i32 = arith.constant 0 : i32
    %c0_i32_0 = arith.constant 0 : i32
    return %arg0, %c0_i32 : i32, i32
  }
}

module attributes {stable_mosaic.version = 11 : i64} {
  func.func @_fused_qnet_kernel(%arg0: i32, %arg1: memref<8x128xf32, #tpu.memory_space<vmem>>, %arg2: memref<128x512xbf16, #tpu.memory_space<vmem>>, %arg3: memref<1x512xf32, #tpu.memory_space<vmem>>, %arg4: memref<512x256xbf16, #tpu.memory_space<vmem>>, %arg5: memref<1x256xf32, #tpu.memory_space<vmem>>, %arg6: memref<256x256xbf16, #tpu.memory_space<vmem>>, %arg7: memref<1x256xf32, #tpu.memory_space<vmem>>, %arg8: memref<8x256xf32, #tpu.memory_space<vmem>>) attributes {dimension_semantics = [#tpu.dimension_semantics<parallel>], iteration_bounds = array<i64: 1>, scalar_prefetch = 0 : i64, scratch_operands = 0 : i64, tpu.core_type = #tpu.core_type<tc>, window_params = [{transform_indices = @transform_0, window_bounds = array<i64: 8, 128>}, {pipeline_mode = #tpu.pipeline_mode<synchronous>, transform_indices = @transform_1, window_bounds = array<i64: 128, 512>}, {pipeline_mode = #tpu.pipeline_mode<synchronous>, transform_indices = @transform_2, window_bounds = array<i64: 1, 512>}, {pipeline_mode = #tpu.pipeline_mode<synchronous>, transform_indices = @transform_3, window_bounds = array<i64: 512, 256>}, {pipeline_mode = #tpu.pipeline_mode<synchronous>, transform_indices = @transform_4, window_bounds = array<i64: 1, 256>}, {pipeline_mode = #tpu.pipeline_mode<synchronous>, transform_indices = @transform_5, window_bounds = array<i64: 256, 256>}, {pipeline_mode = #tpu.pipeline_mode<synchronous>, transform_indices = @transform_6, window_bounds = array<i64: 1, 256>}, {transform_indices = @transform_7, window_bounds = array<i64: 8, 256>}]} {
    %c0 = arith.constant 0 : index
    %c0_0 = arith.constant 0 : index
    %0 = vector.load %arg1[%c0, %c0_0] : memref<8x128xf32, #tpu.memory_space<vmem>>, vector<8x128xf32>
    %1 = arith.truncf %0 : vector<8x128xf32> to vector<8x128xbf16>
    %c0_1 = arith.constant 0 : index
    %c0_2 = arith.constant 0 : index
    %2 = vector.load %arg2[%c0_1, %c0_2] : memref<128x512xbf16, #tpu.memory_space<vmem>>, vector<128x512xbf16>
    %cst = arith.constant dense<0.000000e+00> : vector<8x512xf32>
    %3 = tpu.matmul %1, %2, %cst {dimension_numbers = #tpu.dot_dimension_numbers<[1], [0], [0], [1], [0, 0, 1, 1], [], []>} : vector<8x128xbf16>, vector<128x512xbf16>, vector<8x512xf32> -> vector<8x512xf32>
    %c0_3 = arith.constant 0 : index
    %c0_4 = arith.constant 0 : index
    %4 = vector.load %arg3[%c0_3, %c0_4] : memref<1x512xf32, #tpu.memory_space<vmem>>, vector<1x512xf32>
    %5 = vector.broadcast %4 : vector<1x512xf32> to vector<8x512xf32>
    %6 = arith.addf %3, %5 : vector<8x512xf32>
    %cst_5 = arith.constant 0.000000e+00 : f32
    %7 = vector.broadcast %cst_5 : f32 to vector<8x512xf32>
    %8 = arith.maximumf %6, %7 : vector<8x512xf32>
    %9 = arith.truncf %8 : vector<8x512xf32> to vector<8x512xbf16>
    %c0_6 = arith.constant 0 : index
    %c0_7 = arith.constant 0 : index
    %10 = vector.load %arg4[%c0_6, %c0_7] : memref<512x256xbf16, #tpu.memory_space<vmem>>, vector<512x256xbf16>
    %cst_8 = arith.constant dense<0.000000e+00> : vector<8x256xf32>
    %11 = tpu.matmul %9, %10, %cst_8 {dimension_numbers = #tpu.dot_dimension_numbers<[1], [0], [0], [1], [0, 0, 1, 1], [], []>} : vector<8x512xbf16>, vector<512x256xbf16>, vector<8x256xf32> -> vector<8x256xf32>
    %c0_9 = arith.constant 0 : index
    %c0_10 = arith.constant 0 : index
    %12 = vector.load %arg5[%c0_9, %c0_10] : memref<1x256xf32, #tpu.memory_space<vmem>>, vector<1x256xf32>
    %13 = vector.broadcast %12 : vector<1x256xf32> to vector<8x256xf32>
    %14 = arith.addf %11, %13 : vector<8x256xf32>
    %cst_11 = arith.constant 0.000000e+00 : f32
    %15 = vector.broadcast %cst_11 : f32 to vector<8x256xf32>
    %16 = arith.maximumf %14, %15 : vector<8x256xf32>
    %17 = arith.truncf %16 : vector<8x256xf32> to vector<8x256xbf16>
    %c0_12 = arith.constant 0 : index
    %c0_13 = arith.constant 0 : index
    %18 = vector.load %arg6[%c0_12, %c0_13] : memref<256x256xbf16, #tpu.memory_space<vmem>>, vector<256x256xbf16>
    %cst_14 = arith.constant dense<0.000000e+00> : vector<8x256xf32>
    %19 = tpu.matmul %17, %18, %cst_14 {dimension_numbers = #tpu.dot_dimension_numbers<[1], [0], [0], [1], [0, 0, 1, 1], [], []>} : vector<8x256xbf16>, vector<256x256xbf16>, vector<8x256xf32> -> vector<8x256xf32>
    %c0_15 = arith.constant 0 : index
    %c0_16 = arith.constant 0 : index
    %20 = vector.load %arg7[%c0_15, %c0_16] : memref<1x256xf32, #tpu.memory_space<vmem>>, vector<1x256xf32>
    %21 = vector.broadcast %20 : vector<1x256xf32> to vector<8x256xf32>
    %22 = arith.addf %19, %21 : vector<8x256xf32>
    %c0_17 = arith.constant 0 : index
    %c0_18 = arith.constant 0 : index
    %23 = vector.load %arg8[%c0_17, %c0_18] : memref<8x256xf32, #tpu.memory_space<vmem>>, vector<8x256xf32>
    tpu.vector_store %arg8[%c0_17, %c0_18], %22 {strides = array<i32>} : memref<8x256xf32, #tpu.memory_space<vmem>>, vector<8x256xf32>,
    return
  }
  func.func @transform_0(%arg0: i32) -> (i32, i32) {
    %c0_i32 = arith.constant 0 : i32
    %c0_i32_0 = arith.constant 0 : i32
    return %arg0, %c0_i32 : i32, i32
  }
  func.func @transform_1(%arg0: i32) -> (i32, i32) {
    %c0_i32 = arith.constant 0 : i32
    %c0_i32_0 = arith.constant 0 : i32
    %c0_i32_1 = arith.constant 0 : i32
    return %c0_i32, %c0_i32_0 : i32, i32
  }
  func.func @transform_2(%arg0: i32) -> (i32, i32) {
    %c0_i32 = arith.constant 0 : i32
    %c0_i32_0 = arith.constant 0 : i32
    %c0_i32_1 = arith.constant 0 : i32
    return %c0_i32, %c0_i32_0 : i32, i32
  }
  func.func @transform_3(%arg0: i32) -> (i32, i32) {
    %c0_i32 = arith.constant 0 : i32
    %c0_i32_0 = arith.constant 0 : i32
    %c0_i32_1 = arith.constant 0 : i32
    return %c0_i32, %c0_i32_0 : i32, i32
  }
  func.func @transform_4(%arg0: i32) -> (i32, i32) {
    %c0_i32 = arith.constant 0 : i32
    %c0_i32_0 = arith.constant 0 : i32
    %c0_i32_1 = arith.constant 0 : i32
    return %c0_i32, %c0_i32_0 : i32, i32
  }
  func.func @transform_5(%arg0: i32) -> (i32, i32) {
    %c0_i32 = arith.constant 0 : i32
    %c0_i32_0 = arith.constant 0 : i32
    %c0_i32_1 = arith.constant 0 : i32
    return %c0_i32, %c0_i32_0 : i32, i32
  }
  func.func @transform_6(%arg0: i32) -> (i32, i32) {
    %c0_i32 = arith.constant 0 : i32
    %c0_i32_0 = arith.constant 0 : i32
    %c0_i32_1 = arith.constant 0 : i32
    return %c0_i32, %c0_i32_0 : i32, i32
  }
  func.func @transform_7(%arg0: i32) -> (i32, i32) {
    %c0_i32 = arith.constant 0 : i32
    %c0_i32_0 = arith.constant 0 : i32
    return %arg0, %c0_i32 : i32, i32
  }
}

</mosaic_0001>

<bundles_post_ra>
// kernel: _forward_padded.1
= control target key start
LH: loop header
LB: loop body
LE: loop exit
PB: predicated region body
PF: predicated region fallthrough
CT: control target
= control target key end

     0   :  { %12 = vsyncpa [#allocation3], 0  ;;  %s1590_s0 = inlined_call_operand.vmem [shape: f32[8,128], index: 0, kind: input, shape index: {}]   ;;  %s1591_s1 = inlined_call_operand.hbm [shape: bf16[128,512], index: 1, kind: input, shape index: {}]   ;;  %s1592_s2 = inlined_call_operand.vmem [shape: f32[1,512], index: 2, kind: input, shape index: {}]   ;;  %s1593_s3 = inlined_call_operand.hbm [shape: bf16[512,256], index: 3, kind: input, shape index: {}]   ;;  %s1594_s4 = inlined_call_operand.vmem [shape: f32[1,256], index: 4, kind: input, shape index: {}]   ;;  %s1595_s5 = inlined_call_operand.hbm [shape: bf16[256,256], index: 5, kind: input, shape index: {}]   ;;  %s1596_s6 = inlined_call_operand.vmem [shape: f32[1,256], index: 6, kind: input, shape index: {}]   ;;  %s1597_s7 = inlined_call_operand.vmem [shape: f32[8,256], index: 7, kind: output, shape index: {}]  }
   0x1   :  { %13 = vsyncpa [#allocation5], 0  ;;  %s1501_s24 = smov [#allocation4]  }
   0x2   :  { %s35_s25 = sshll.u32 %s1501_s24, 4  ;;  %s36_s25 = int_to_ptr.vmem [resolvable:$true] %s35_s25 }
   0x3   :  { %s1445_s26 = scalar_lea.vmem %s36_s25, 8192  ;;  %p1450_p1 = scmp.lt.s32.totalorder %s36_s25, %s36_s25 }
   0x4   :  { %p1446_p0 = scmp.ne.s32.totalorder %s36_s25, %s1445_s26  ;;  %p1451_p2 = scmp.lt.s32.totalorder %s1445_s26, %s1445_s26 }
   0x6   :  { %p1452_p3 = por %p1451_p2, %p1450_p1 }
   0x8   :  { %p1453_p4 = pnand %p1452_p3, %p1446_p0 }
   0xa   :  { %1456 = shalt.err (!%p1453_p4)
}
   0xb   :  { %s1502_s27 = smov 128   ;;  %s1503_s28 = smov 8  }
   0xc   :  { %41 = dma.hbm_to_vmem [thread:$0]  %s1593_s3, 8192, %s36_s25, [#allocation5], %s1502_s27, %s1502_s27, %s1503_s28  }
   0xd   :  { %s1504_s8 = smov [#allocation2]  }
   0xe   :  { %s21_s9 = sshll.u32 %s1504_s8, 4  ;;  %s22_s9 = int_to_ptr.vmem [resolvable:$true] %s21_s9 }
   0xf   :  { %s1465_s10 = scalar_lea.vmem %s22_s9, 4096  ;;  %p1470_p6 = scmp.lt.s32.totalorder %s22_s9, %s22_s9 }
  0x10   :  { %p1466_p5 = scmp.ne.s32.totalorder %s22_s9, %s1465_s10  ;;  %p1471_p7 = scmp.lt.s32.totalorder %s1465_s10, %s1465_s10 }
  0x12   :  { %p1472_p8 = por %p1471_p7, %p1470_p6 }
  0x14   :  { %p1473_p9 = pnand %p1472_p8, %p1466_p5 }
  0x16   :  { %1476 = shalt.err (!%p1473_p9)
}
  0x17   :  { %s1505_s11 = smov 256   ;;  %s1506_s12 = smov 16  }
  0x18   :  { %27 = dma.hbm_to_vmem [thread:$0]  %s1591_s1, 4096, %s22_s9, [#allocation3], %s1505_s11, %s1505_s11, %s1506_s12  }
  0x19   :  { %s1507_s15 = smov [#allocation6]  }
  0x1a   :  { %s49_s16 = sshll.u32 %s1507_s15, 4  ;;  %s50_s16 = int_to_ptr.vmem [resolvable:$true] %s49_s16 }
  0x1b   :  { %s1485_s3 = scalar_lea.vmem %s50_s16, 4096  ;;  %p1490_p11 = scmp.lt.s32.totalorder %s50_s16, %s50_s16 }
  0x1c   :  { %p1486_p10 = scmp.ne.s32.totalorder %s50_s16, %s1485_s3  ;;  %p1491_p12 = scmp.lt.s32.totalorder %s1485_s3, %s1485_s3 }
  0x1e   :  { %p1492_p13 = por %p1491_p12, %p1490_p11 }
  0x20   :  { %p1493_p0 = pnand %p1492_p13, %p1486_p10 }
  0x22   :  { %1496 = shalt.err (!%p1493_p0)
}
  0x23   :  { %55 = dma.hbm_to_vmem [thread:$0]  %s1595_s5, 4096, %s50_s16, [#allocation5], %s1502_s27, %s1502_s27, %s1503_s28  }
  0x24   :  { %1497 = dma.done.wait [#allocation3], 4096  }
  0x25   :  { %1498 = vsyncadd [#allocation3], 4294963200 }
  0x26   :  { %1499 = dma.done.wait [#allocation5], 12288  }
  0x27   :  { %1500 = vsyncadd [#allocation5], 4294955008  ;;  %v1508_v0 = vmov 0   ;;  %v1245_v1 = vld [vmem:[#allocation2 + $0xe4] ss:$16 sps:$4 sm:$0xff]  }
  0x28   :  { %316 = vmatprep.mubr.bf16.mxu1 %v1508_v0  ;;  %v1247_v2 = vld [vmem:[#allocation2 + $0xe0] ss:$16 sps:$4 sm:$0xff]   ;;  %284 = vmatprep.subr.bf16.mxu1 %v1245_v1  ;;  %v1248_v3 = vld [vmem:[#allocation2 + $0xc4] ss:$16 sps:$4 sm:$0xff]   ;;  %v1271_v23 = vld [vmem:[#allocation2 + $0xec] ss:$16 sps:$4 sm:$0xff]  }
  0x29   :  { %285 = vmatpush1.bf16.msra.mxu1 %v1247_v2  ;;  %v1250_v4 = vld [vmem:[#allocation2 + $0xc0] ss:$16 sps:$4 sm:$0xff]   ;;  %v1251_v5 = vld [vmem:[#allocation2 + $0xa4] ss:$16 sps:$4 sm:$0xff]   ;;  %v1269_v27 = vld [vmem:[#allocation2 + $0xe8] ss:$16 sps:$4 sm:$0xff]  }
  0x2a   :  { %286 = vmatprep.subr.bf16.mxu1 %v1248_v3  ;;  %v1253_v6 = vld [vmem:[#allocation2 + $0xa0] ss:$16 sps:$4 sm:$0xff]   ;;  %v1254_v7 = vld [vmem:[#allocation2 + $0x84] ss:$16 sps:$4 sm:$0xff]   ;;  %v1274_v28 = vld [vmem:[#allocation2 + $0xcc] ss:$16 sps:$4 sm:$0xff]  }
  0x2b   :  { %v1256_v8 = vld [vmem:[#allocation2 + $0x80] ss:$16 sps:$4 sm:$0xff]   ;;  %v1257_v9 = vld [vmem:[#allocation2 + $0x64] ss:$16 sps:$4 sm:$0xff]   ;;  %v1272_v31 = vld [vmem:[#allocation2 + $0xc8] ss:$16 sps:$4 sm:$0xff]  }
  0x2c   :  { %v1259_v10 = vld [vmem:[#allocation2 + $0x60] ss:$16 sps:$4 sm:$0xff]   ;;  %v1260_v11 = vld [vmem:[#allocation2 + $0x44] ss:$16 sps:$4 sm:$0xff]   ;;  %v1277_v32 = vld [vmem:[#allocation2 + $0xac] ss:$16 sps:$4 sm:$0xff]  }
  0x2d   :  { %287 = vmatpush1.bf16.msra.mxu1 %v1250_v4  ;;  %v1262_v12 = vld [vmem:[#allocation2 + $0x40] ss:$16 sps:$4 sm:$0xff]   ;;  %v1263_v13 = vld [vmem:[#allocation2 + $0x24] ss:$16 sps:$4 sm:$0xff]   ;;  %v1275_v35 = vld [vmem:[#allocation2 + $0xa8] ss:$16 sps:$4 sm:$0xff]  }
  0x2e   :  { %288 = vmatprep.subr.bf16.mxu1 %v1251_v5  ;;  %v1265_v14 = vld [vmem:[#allocation2 + $0x20] ss:$16 sps:$4 sm:$0xff]   ;;  %v1293_v15 = vld [vmem:[#allocation4 + $0x74] ss:$8 sps:$4 sm:$0xff]   ;;  %v1296_v17 = vld [vmem:[#allocation4 + $0x64] ss:$8 sps:$4 sm:$0xff]  }
  0x2f   :  { %v1295_v16 = vld [vmem:[#allocation4 + $0x70] ss:$8 sps:$4 sm:$0xff]   ;;  %v1266_v18 = vld [vmem:[#allocation2 + $0x4] ss:$16 sps:$4 sm:$0xff]   ;;  %770 = vmatprep.subr.bf16.mxu0 %v1293_v15  ;;  %v1298_v19 = vld [vmem:[#allocation4 + $0x60] ss:$8 sps:$4 sm:$0xff]  }
  0x30   :  { %771 = vmatpush1.bf16.msra.mxu0 %v1295_v16  ;;  %v1268_v20 = vld [vmem:[#allocation2] ss:$16 sps:$4 sm:$0xff]   ;;  %v1299_v21 = vld [vmem:[#allocation4 + $0x54] ss:$8 sps:$4 sm:$0xff]   ;;  %v1302_v26 = vld [vmem:[#allocation4 + $0x44] ss:$8 sps:$4 sm:$0xff]  }
  0x31   :  { %289 = vmatpush1.bf16.msra.mxu1 %v1253_v6  ;;  %772 = vmatprep.subr.bf16.mxu0 %v1296_v17  ;;  %v68_v22 = vld [vmem:[%s1590_s0] sm:$0xff]  ;;  %v1301_v24 = vld [vmem:[#allocation4 + $0x50] ss:$8 sps:$4 sm:$0xff]   ;;  %v1305_v30 = vld [vmem:[#allocation4 + $0x34] ss:$8 sps:$4 sm:$0xff]  }
  0x32   :  { %290 = vmatprep.subr.bf16.mxu1 %v1254_v7  ;;  %v1561_v25 = vpack.c.bf16 %v68_v22, %v68_v22  ;;  %v1304_v29 = vld [vmem:[#allocation4 + $0x40] ss:$8 sps:$4 sm:$0xff]   ;;  %v1307_v33 = vld [vmem:[#allocation4 + $0x30] ss:$8 sps:$4 sm:$0xff]   ;;  %v1308_v34 = vld [vmem:[#allocation4 + $0x24] ss:$8 sps:$4 sm:$0xff]  }
  0x33   :  { %v1280_v36 = vld [vmem:[#allocation2 + $0x8c] ss:$16 sps:$4 sm:$0xff]   ;;  %v1310_v37 = vld [vmem:[#allocation4 + $0x20] ss:$8 sps:$4 sm:$0xff]   ;;  %v1313_v41 = vld [vmem:[#allocation4 + $0x10] ss:$8 sps:$4 sm:$0xff]  }
  0x34   :  { %773 = vmatpush1.bf16.msra.mxu0 %v1298_v19  ;;  %v1311_v38 = vld [vmem:[#allocation4 + $0x14] ss:$8 sps:$4 sm:$0xff]   ;;  %v1278_v39 = vld [vmem:[#allocation2 + $0x88] ss:$16 sps:$4 sm:$0xff]   ;;  %v1314_v42 = vld [vmem:[#allocation4 + $0x4] ss:$8 sps:$4 sm:$0xff]  }
  0x35   :  { %291 = vmatpush1.bf16.msra.mxu1 %v1256_v8  ;;  %774 = vmatprep.subr.bf16.mxu0 %v1299_v21  ;;  %v1283_v40 = vld [vmem:[#allocation2 + $0x6c] ss:$16 sps:$4 sm:$0xff]   ;;  %v1281_v43 = vld [vmem:[#allocation2 + $0x68] ss:$16 sps:$4 sm:$0xff]  }
  0x36   :  { %292 = vmatprep.subr.bf16.mxu1 %v1257_v9  ;;  %v1286_v44 = vld [vmem:[#allocation2 + $0x4c] ss:$16 sps:$4 sm:$0xff]   ;;  %v1316_v45 = vld [vmem:[#allocation4] ss:$8 sps:$4 sm:$0xff]   ;;  %v1322_v49 = vld [vmem:[#allocation4 + $0xf0] ss:$8 sps:$4 sm:$0xff]  }
  0x37   :  { %v1317_v46 = vld [vmem:[#allocation4 + $0xf4] ss:$8 sps:$4 sm:$0xff]   ;;  %v1284_v47 = vld [vmem:[#allocation2 + $0x48] ss:$16 sps:$4 sm:$0xff]   ;;  %v1323_v50 = vld [vmem:[#allocation4 + $0xe4] ss:$8 sps:$4 sm:$0xff]  }
  0x38   :  { %775 = vmatpush1.bf16.msra.mxu0 %v1301_v24  ;;  %v1289_v48 = vld [vmem:[#allocation2 + $0x2c] ss:$16 sps:$4 sm:$0xff]   ;;  %v1287_v51 = vld [vmem:[#allocation2 + $0x28] ss:$16 sps:$4 sm:$0xff]  }
  0x39   :  { %293 = vmatpush1.bf16.msra.mxu1 %v1259_v10  ;;  %776 = vmatprep.subr.bf16.mxu0 %v1302_v26  ;;  %v1292_v52 = vld [vmem:[#allocation2 + $0xc] ss:$16 sps:$4 sm:$0xff]   ;;  %v1328_v53 = vld [vmem:[#allocation4 + $0xe0] ss:$8 sps:$4 sm:$0xff]   ;;  %v1334_v57 = vld [vmem:[#allocation4 + $0xd0] ss:$8 sps:$4 sm:$0xff]  }
  0x3a   :  { %294 = vmatprep.subr.bf16.mxu1 %v1260_v11  ;;  %v1329_v54 = vld [vmem:[#allocation4 + $0xd4] ss:$8 sps:$4 sm:$0xff]   ;;  %v1290_v55 = vld [vmem:[#allocation2 + $0x8] ss:$16 sps:$4 sm:$0xff]   ;;  %v1335_v58 = vld [vmem:[#allocation4 + $0xc4] ss:$8 sps:$4 sm:$0xff]  }
  0x3b   :  { %v1321_v56 = vld [vmem:[#allocation4 + $0x174] ss:$8 sps:$4 sm:$0xff]   ;;  %v1319_v59 = vld [vmem:[#allocation4 + $0x170] ss:$8 sps:$4 sm:$0xff]   ;;  %v1327_v60 = vld [vmem:[#allocation4 + $0x164] ss:$8 sps:$4 sm:$0xff]  }
  0x3c   :  { %777 = vmatpush1.bf16.msra.mxu0 %v1304_v29  ;;  %v1340_v61 = vld [vmem:[#allocation4 + $0xc0] ss:$8 sps:$4 sm:$0xff]   ;;  %v1341_v62 = vld [vmem:[#allocation4 + $0xb4] ss:$8 sps:$4 sm:$0xff]   ;;  %v1346_v1 = vld [vmem:[#allocation4 + $0xb0] ss:$8 sps:$4 sm:$0xff]  }
  0x3d   :  { %295 = vmatpush1.bf16.msra.mxu1 %v1262_v12  ;;  %778 = vmatprep.subr.bf16.mxu0 %v1305_v30  ;;  %v1325_v63 = vld [vmem:[#allocation4 + $0x160] ss:$8 sps:$4 sm:$0xff]   ;;  %v1347_v2 = vld [vmem:[#allocation4 + $0xa4] ss:$8 sps:$4 sm:$0xff]   ;;  %v1331_v3 = vld [vmem:[#allocation4 + $0x150] ss:$8 sps:$4 sm:$0xff]  }
  0x3e   :  { %296 = vmatprep.subr.bf16.mxu1 %v1263_v13  ;;  %v1339_v4 = vld [vmem:[#allocation4 + $0x144] ss:$8 sps:$4 sm:$0xff]   ;;  %v1352_v5 = vld [vmem:[#allocation4 + $0xa0] ss:$8 sps:$4 sm:$0xff]   ;;  %v1345_v7 = vld [vmem:[#allocation4 + $0x134] ss:$8 sps:$4 sm:$0xff]  }
  0x3f   :  { %v1337_v6 = vld [vmem:[#allocation4 + $0x140] ss:$8 sps:$4 sm:$0xff]   ;;  %v1343_v8 = vld [vmem:[#allocation4 + $0x130] ss:$8 sps:$4 sm:$0xff]   ;;  %v1351_v9 = vld [vmem:[#allocation4 + $0x124] ss:$8 sps:$4 sm:$0xff]  }
  0x40   :  { %779 = vmatpush1.bf16.msra.mxu0 %v1307_v33  ;;  %v1349_v10 = vld [vmem:[#allocation4 + $0x120] ss:$8 sps:$4 sm:$0xff]   ;;  %v1353_v11 = vld [vmem:[#allocation4 + $0x94] ss:$8 sps:$4 sm:$0xff]   ;;  %v1355_v13 = vld [vmem:[#allocation4 + $0x110] ss:$8 sps:$4 sm:$0xff]  }
  0x41   :  { %297 = vmatpush1.bf16.msra.mxu1 %v1265_v14  ;;  %780 = vmatprep.subr.bf16.mxu0 %v1308_v34  ;;  %v1357_v12 = vld [vmem:[#allocation4 + $0x114] ss:$8 sps:$4 sm:$0xff]   ;;  %v1358_v14 = vld [vmem:[#allocation4 + $0x90] ss:$8 sps:$4 sm:$0xff]   ;;  %v1359_v15 = vld [vmem:[#allocation4 + $0x84] ss:$8 sps:$4 sm:$0xff]  }
  0x42   :  { %298 = vmatprep.subr.bf16.mxu1 %v1266_v18  ;;  %v1363_v16 = vld [vmem:[#allocation4 + $0x104] ss:$8 sps:$4 sm:$0xff]   ;;  %v1361_v17 = vld [vmem:[#allocation4 + $0x100] ss:$8 sps:$4 sm:$0xff]   ;;  %v1367_v19 = vld [vmem:[#allocation4 + $0x1f4] ss:$8 sps:$4 sm:$0xff]  }
  0x43   :  { %v1364_v18 = vld [vmem:[#allocation4 + $0x80] ss:$8 sps:$4 sm:$0xff]   ;;  %v1370_v21 = vld [vmem:[#allocation4 + $0x1e4] ss:$8 sps:$4 sm:$0xff]   ;;  %v1371_v24 = vld [vmem:[#allocation4 + $0x1d0] ss:$8 sps:$4 sm:$0xff]  }
  0x44   :  { %781 = vmatpush1.bf16.msra.mxu0 %v1310_v37  ;;  %v1368_v22 = vld [vmem:[#allocation4 + $0x1e0] ss:$8 sps:$4 sm:$0xff]   ;;  %v1382_v29 = vld [vmem:[#allocation4 + $0x1a4] ss:$8 sps:$4 sm:$0xff]  }
  0x45   :  { %299 = vmatpush1.bf16.msra.mxu1 %v1268_v20  ;;  %782 = vmatprep.subr.bf16.mxu0 %v1311_v38  ;;  %v1365_v20 = vld [vmem:[#allocation4 + $0x1f0] ss:$8 sps:$4 sm:$0xff]   ;;  %v1374_v26 = vld [vmem:[#allocation4 + $0x1c0] ss:$8 sps:$4 sm:$0xff]   ;;  %v1388_v33 = vld [vmem:[#allocation4 + $0x184] ss:$8 sps:$4 sm:$0xff]  }
  0x46   :  { %325 = vmatprep.subr.bf16.mxu1 %v1271_v23  ;;  %v1373_v23 = vld [vmem:[#allocation4 + $0x1d4] ss:$8 sps:$4 sm:$0xff]   ;;  %v1380_v30 = vld [vmem:[#allocation4 + $0x1a0] ss:$8 sps:$4 sm:$0xff]  }
  0x47   :  { %v1386_v34 = vld [vmem:[#allocation4 + $0x180] ss:$8 sps:$4 sm:$0xff]  }
  0x48   :  { %317 = vmatmul.mubr.bf16.vlgmr.msra.gmra.mxu1 %v1561_v25  ;;  %783 = vmatpush1.bf16.msra.mxu0 %v1313_v41 }
  0x49   :  { %326 = vmatpush1.bf16.msra.mxu1 %v1269_v27  ;;  %357 = vmatprep.mubr.bf16.mxu1 %v1508_v0  ;;  %v1333_v0 = vld [vmem:[#allocation4 + $0x154] ss:$8 sps:$4 sm:$0xff]  }
  0x4a   :  { %327 = vmatprep.subr.bf16.mxu1 %v1274_v28  ;;  %784 = vmatprep.subr.bf16.mxu0 %v1314_v42  ;;  %v1379_v27 = vld [vmem:[#allocation4 + $0x1b4] ss:$8 sps:$4 sm:$0xff]   ;;  %v1377_v28 = vld [vmem:[#allocation4 + $0x1b0] ss:$8 sps:$4 sm:$0xff]  }
  0x4c   :  { %785 = vmatpush1.bf16.msra.mxu0 %v1316_v45 }
  0x4d   :  { %328 = vmatpush1.bf16.msra.mxu1 %v1272_v31  ;;  %786 = vmatprep.subr.bf16.mxu0 %v1317_v46  ;;  %v1385_v31 = vld [vmem:[#allocation4 + $0x194] ss:$8 sps:$4 sm:$0xff]  }
  0x4e   :  { %329 = vmatprep.subr.bf16.mxu1 %v1277_v32  ;;  %v1383_v32 = vld [vmem:[#allocation4 + $0x190] ss:$8 sps:$4 sm:$0xff]  }
  0x50   :  { %787 = vmatpush2.bf16.msra.mxu0 %v1322_v49 }
  0x51   :  { %330 = vmatpush1.bf16.msra.mxu1 %v1275_v35  ;;  %788 = vmatprep.subr.bf16.mxu0 %v1323_v50  ;;  %v1391_v35 = vld [vmem:[#allocation6 + $0x74] ss:$8 sps:$4 sm:$0xff]  }
  0x52   :  { %331 = vmatprep.subr.bf16.mxu1 %v1280_v36  ;;  %v104_v36 = vlaneseq }
  0x54   :  { %789 = vmatpush2.bf16.msra.mxu0 %v1328_v53  ;;  %v105_v37 = vshrl.u32 %v104_v36, 7 }
  0x55   :  { %332 = vmatpush1.bf16.msra.mxu1 %v1278_v39  ;;  %790 = vmatprep.subr.bf16.mxu0 %v1329_v54  ;;  %v102_v39 = vld [vmem:[%s1592_s2] sm:$0xf]  ;;  %v1394_v54 = vld [vmem:[#allocation6 + $0x64] ss:$8 sps:$4 sm:$0xff]  }
  0x56   :  { %333 = vmatprep.subr.bf16.mxu1 %v1283_v40  ;;  %v1565_v38 = vsub.s32 0, %v105_v37  ;;  %v1570_v40 = vsub.s32 1, %v105_v37 }
  0x58   :  { %791 = vmatpush2.bf16.msra.mxu0 %v1334_v57  ;;  %v107_v41 = vrot.slane %v102_v39, %v1565_v38  ;;  %v111_v42 = vrot.slane %v102_v39, %v1570_v40  ;;  %v1395_v57 = vld [vmem:[#allocation6 + $0x50] ss:$8 sps:$4 sm:$0xff]  }
  0x59   :  { %334 = vmatpush1.bf16.msra.mxu1 %v1281_v43  ;;  %792 = vmatprep.subr.bf16.mxu0 %v1335_v58  ;;  %v1400_v58 = vld [vmem:[#allocation6 + $0x44] ss:$8 sps:$4 sm:$0xff]  }
  0x5a   :  { %335 = vmatprep.subr.bf16.mxu1 %v1286_v44 }
  0x5c   :  { %793 = vmatpush2.bf16.msra.mxu0 %v1340_v61  ;;  %v1401_v61 = vld [vmem:[#allocation6 + $0x30] ss:$8 sps:$4 sm:$0xff]  }
  0x5d   :  { %336 = vmatpush1.bf16.msra.mxu1 %v1284_v47  ;;  %794 = vmatprep.subr.bf16.mxu0 %v1341_v62  ;;  %v1406_v62 = vld [vmem:[#allocation6 + $0x24] ss:$8 sps:$4 sm:$0xff]  }
  0x5e   :  { %337 = vmatprep.subr.bf16.mxu1 %v1289_v48 }
  0x60   :  { %795 = vmatpush2.bf16.msra.mxu0 %v1346_v1  ;;  %v1404_v1 = vld [vmem:[#allocation6 + $0x20] ss:$8 sps:$4 sm:$0xff]  }
  0x61   :  { %338 = vmatpush1.bf16.msra.mxu1 %v1287_v51  ;;  %796 = vmatprep.subr.bf16.mxu0 %v1347_v2 }
  0x62   :  { %339 = vmatprep.subr.bf16.mxu1 %v1292_v52  ;;  %v1389_v52 = vld [vmem:[#allocation6 + $0x70] ss:$8 sps:$4 sm:$0xff]  }
  0x64   :  { %797 = vmatpush2.bf16.msra.mxu0 %v1352_v5 }
  0x65   :  { %340 = vmatpush1.bf16.msra.mxu1 %v1290_v55  ;;  %798 = vmatprep.subr.bf16.mxu0 %v1353_v11  ;;  %v1392_v55 = vld [vmem:[#allocation6 + $0x60] ss:$8 sps:$4 sm:$0xff]  }
  0x66   :  { %811 = vmatprep.subr.bf16.mxu1 %v1321_v56  ;;  %v1397_v56 = vld [vmem:[#allocation6 + $0x54] ss:$8 sps:$4 sm:$0xff]  }
  0x68   :  { %358 = vmatmul.mubr.bf16.vlgmr.msra.gmra.mxu1 %v1561_v25  ;;  %799 = vmatpush2.bf16.msra.mxu0 %v1358_v14  ;;  %v1376_v25 = vld [vmem:[#allocation4 + $0x1c4] ss:$8 sps:$4 sm:$0xff]   ;;  %v1409_v14 = vld [vmem:[#allocation6 + $0x14] ss:$8 sps:$4 sm:$0xff]  }
  0x69   :  { %812 = vmatpush1.bf16.msra.mxu1 %v1319_v59  ;;  %800 = vmatprep.subr.bf16.mxu0 %v1359_v15  ;;  %v1398_v59 = vld [vmem:[#allocation6 + $0x40] ss:$8 sps:$4 sm:$0xff]   ;;  %v1407_v15 = vld [vmem:[#allocation6 + $0x10] ss:$8 sps:$4 sm:$0xff]  }
  0x6a   :  { %813 = vmatprep.subr.bf16.mxu1 %v1327_v60  ;;  %v1403_v60 = vld [vmem:[#allocation6 + $0x34] ss:$8 sps:$4 sm:$0xff]  }
  0x6c   :  { %801 = vmatpush2.bf16.msra.mxu0 %v1364_v18  ;;  %v1415_v18 = vld [vmem:[#allocation6 + $0xf4] ss:$8 sps:$4 sm:$0xff]  }
  0x6d   :  { %814 = vmatpush1.bf16.msra.mxu1 %v1325_v63  ;;  %1060 = vmatprep.subr.bf16.mxu0 %v1391_v35  ;;  %v114_v63 = vsub.s32 2, %v105_v37 }
  0x6e   :  { %815 = vmatprep.subr.bf16.mxu1 %v1333_v0  ;;  %v118_v0 = vsub.s32 3, %v105_v37 }
  0x6f   :  { %v115_v2 = vrot.slane %v102_v39, %v114_v63 }
  0x71   :  { %816 = vmatpush1.bf16.msra.mxu1 %v1331_v3  ;;  %v119_v3 = vrot.slane %v102_v39, %v118_v0  ;;  %v438_v39 = vld [vmem:[%s1594_s4] sm:$0x3] }
  0x72   :  { %817 = vmatprep.subr.bf16.mxu1 %v1339_v4 }
  0x75   :  { %818 = vmatpush1.bf16.msra.mxu1 %v1337_v6 }
  0x76   :  { %819 = vmatprep.subr.bf16.mxu1 %v1345_v7 }
  0x79   :  { %820 = vmatpush1.bf16.msra.mxu1 %v1343_v8 }
  0x7a   :  { %821 = vmatprep.subr.bf16.mxu1 %v1351_v9 }
  0x7d   :  { %822 = vmatpush1.bf16.msra.mxu1 %v1349_v10 }
  0x7e   :  { %823 = vmatprep.subr.bf16.mxu1 %v1357_v12 }
  0x81   :  { %824 = vmatpush1.bf16.msra.mxu1 %v1355_v13 }
  0x82   :  { %825 = vmatprep.subr.bf16.mxu1 %v1363_v16  ;;  %v1412_v16 = vld [vmem:[#allocation6 + $0x4] ss:$8 sps:$4 sm:$0xff]  }
  0x85   :  { %826 = vmatpush1.bf16.msra.mxu1 %v1361_v17  ;;  %v1410_v17 = vld [vmem:[#allocation6] ss:$8 sps:$4 sm:$0xff]  }
  0x86   :  { %827 = vmatprep.subr.bf16.mxu1 %v1367_v19  ;;  %v1413_v19 = vld [vmem:[#allocation6 + $0xf0] ss:$8 sps:$4 sm:$0xff]  }
  0x89   :  { %828 = vmatpush2.bf16.msra.mxu1 %v1365_v20  ;;  %v1418_v20 = vld [vmem:[#allocation6 + $0xe4] ss:$8 sps:$4 sm:$0xff]  }
  0x8a   :  { %829 = vmatprep.subr.bf16.mxu1 %v1370_v21  ;;  %v1416_v21 = vld [vmem:[#allocation6 + $0xe0] ss:$8 sps:$4 sm:$0xff]  }
  0x8d   :  { %830 = vmatpush2.bf16.msra.mxu1 %v1368_v22  ;;  %v1421_v22 = vld [vmem:[#allocation6 + $0xd4] ss:$8 sps:$4 sm:$0xff]  }
  0x8e   :  { %831 = vmatprep.subr.bf16.mxu1 %v1373_v23  ;;  %v1419_v23 = vld [vmem:[#allocation6 + $0xd0] ss:$8 sps:$4 sm:$0xff]  }
  0x91   :  { %832 = vmatpush2.bf16.msra.mxu1 %v1371_v24  ;;  %v1424_v24 = vld [vmem:[#allocation6 + $0xc4] ss:$8 sps:$4 sm:$0xff]  }
  0x92   :  { %833 = vmatprep.subr.bf16.mxu1 %v1376_v25  ;;  %v1422_v25 = vld [vmem:[#allocation6 + $0xc0] ss:$8 sps:$4 sm:$0xff]  }
  0x95   :  { %834 = vmatpush2.bf16.msra.mxu1 %v1374_v26  ;;  %v1427_v26 = vld [vmem:[#allocation6 + $0xb4] ss:$8 sps:$4 sm:$0xff]  }
  0x96   :  { %835 = vmatprep.subr.bf16.mxu1 %v1379_v27  ;;  %v1425_v27 = vld [vmem:[#allocation6 + $0xb0] ss:$8 sps:$4 sm:$0xff]  }
  0x99   :  { %836 = vmatpush2.bf16.msra.mxu1 %v1377_v28  ;;  %v1430_v28 = vld [vmem:[#allocation6 + $0xa4] ss:$8 sps:$4 sm:$0xff]  }
  0x9a   :  { %837 = vmatprep.subr.bf16.mxu1 %v1382_v29  ;;  %v1428_v29 = vld [vmem:[#allocation6 + $0xa0] ss:$8 sps:$4 sm:$0xff]  }
  0x9d   :  { %838 = vmatpush2.bf16.msra.mxu1 %v1380_v30  ;;  %v1433_v30 = vld [vmem:[#allocation6 + $0x94] ss:$8 sps:$4 sm:$0xff]  }
  0x9e   :  { %839 = vmatprep.subr.bf16.mxu1 %v1385_v31  ;;  %v1431_v31 = vld [vmem:[#allocation6 + $0x90] ss:$8 sps:$4 sm:$0xff]  }
  0xa1   :  { %840 = vmatpush2.bf16.msra.mxu1 %v1383_v32  ;;  %v1436_v32 = vld [vmem:[#allocation6 + $0x84] ss:$8 sps:$4 sm:$0xff]  }
  0xa2   :  { %841 = vmatprep.subr.bf16.mxu1 %v1388_v33  ;;  %v1434_v33 = vld [vmem:[#allocation6 + $0x80] ss:$8 sps:$4 sm:$0xff]  }
  0xa5   :  { %842 = vmatpush2.bf16.msra.mxu1 %v1386_v34 }
 0x108   :  { %v318_v43 = vpop.f32.mrf.mxu1 }
 0x109   :  { %v319_v44 = vadd.f32 %v318_v43, %v107_v41  ;;  %v443_v41 = vrot.slane %v438_v39, %v1565_v38 }
 0x10a   :  { %v320_v45 = vpop.f32.mrf.mxu1 }
 0x10b   :  { %v321_v46 = vadd.f32 %v320_v45, %v111_v42  ;;  %v366_v47 = vmax.f32 %v319_v44, 0.0  ;;  %v447_v42 = vrot.slane %v438_v39, %v1570_v40 }
 0x10c   :  { %v322_v48 = vpop.f32.mrf.mxu1 }
 0x10d   :  { %v367_v49 = vmax.f32 %v321_v46, 0.0  ;;  %v370_v53 = vpack.c.bf16 %v366_v47, %v366_v47 }
 0x10e   :  { %v323_v50 = vpop.f32.mrf.mxu1 }
 0x10f   :  { %v371_v51 = vpack.c.bf16 %v367_v49, %v367_v49 }
 0x111   :  { %802 = vmatprep.mubr.bf16.mxu0 %v371_v51 }
 0x112   :  { %803 = vmatmul.mubr.bf16.vlgmr.msra.gmra.mxu0 %v370_v53 }
 0x113   :  { %1061 = vmatpush1.bf16.msra.mxu0 %v1389_v52 }
 0x114   :  { %1062 = vmatprep.subr.bf16.mxu0 %v1394_v54 }
 0x117   :  { %1063 = vmatpush1.bf16.msra.mxu0 %v1392_v55  ;;  %v888_v55 = vld [vmem:[%s1596_s6] sm:$0x3] }
 0x118   :  { %1064 = vmatprep.subr.bf16.mxu0 %v1397_v56  ;;  %v893_v56 = vrot.slane %v888_v55, %v1565_v38 }
 0x11b   :  { %1065 = vmatpush1.bf16.msra.mxu0 %v1395_v57  ;;  %v897_v57 = vrot.slane %v888_v55, %v1570_v40 }
 0x11c   :  { %1066 = vmatprep.subr.bf16.mxu0 %v1400_v58 }
 0x11f   :  { %1067 = vmatpush1.bf16.msra.mxu0 %v1398_v59 }
 0x120   :  { %1068 = vmatprep.subr.bf16.mxu0 %v1403_v60 }
 0x123   :  { %1069 = vmatpush1.bf16.msra.mxu0 %v1401_v61 }
 0x124   :  { %1070 = vmatprep.subr.bf16.mxu0 %v1406_v62 }
 0x127   :  { %1071 = vmatpush1.bf16.msra.mxu0 %v1404_v1 }
 0x128   :  { %v359_v4 = vpop.f32.mrf.mxu1  ;;  %1072 = vmatprep.subr.bf16.mxu0 %v1409_v14 }
 0x129   :  { %v360_v5 = vadd.f32 %v359_v4, %v115_v2 }
 0x12a   :  { %v361_v6 = vpop.f32.mrf.mxu1 }
 0x12b   :  { %v362_v7 = vadd.f32 %v361_v6, %v119_v3  ;;  %v368_v8 = vmax.f32 %v360_v5, 0.0  ;;  %1073 = vmatpush1.bf16.msra.mxu0 %v1407_v15 }
 0x12c   :  { %v363_v9 = vpop.f32.mrf.mxu1  ;;  %1074 = vmatprep.subr.bf16.mxu0 %v1412_v16 }
 0x12d   :  { %v369_v10 = vmax.f32 %v362_v7, 0.0  ;;  %v372_v13 = vpack.c.bf16 %v368_v8, %v368_v8 }
 0x12e   :  { %v364_v11 = vpop.f32.mrf.mxu1 }
 0x12f   :  { %v373_v12 = vpack.c.bf16 %v369_v10, %v369_v10  ;;  %1075 = vmatpush1.bf16.msra.mxu0 %v1410_v17 }
 0x130   :  { %1076 = vmatprep.subr.bf16.mxu0 %v1415_v18 }
 0x131   :  { %843 = vmatprep.mubr.bf16.mxu1 %v373_v12 }
 0x132   :  { %844 = vmatmul.mubr.bf16.vlgmr.msra.gmra.mxu1 %v372_v13 }
 0x133   :  { %1077 = vmatpush2.bf16.msra.mxu0 %v1413_v19 }
 0x134   :  { %1078 = vmatprep.subr.bf16.mxu0 %v1418_v20 }
 0x137   :  { %1079 = vmatpush2.bf16.msra.mxu0 %v1416_v21 }
 0x138   :  { %1080 = vmatprep.subr.bf16.mxu0 %v1421_v22 }
 0x13b   :  { %1081 = vmatpush2.bf16.msra.mxu0 %v1419_v23 }
 0x13c   :  { %1082 = vmatprep.subr.bf16.mxu0 %v1424_v24 }
 0x13f   :  { %1083 = vmatpush2.bf16.msra.mxu0 %v1422_v25 }
 0x140   :  { %1084 = vmatprep.subr.bf16.mxu0 %v1427_v26 }
 0x143   :  { %1085 = vmatpush2.bf16.msra.mxu0 %v1425_v27 }
 0x144   :  { %1086 = vmatprep.subr.bf16.mxu0 %v1430_v28 }
 0x147   :  { %1087 = vmatpush2.bf16.msra.mxu0 %v1428_v29 }
 0x148   :  { %1088 = vmatprep.subr.bf16.mxu0 %v1433_v30 }
 0x14b   :  { %1089 = vmatpush2.bf16.msra.mxu0 %v1431_v31 }
 0x14c   :  { %1090 = vmatprep.subr.bf16.mxu0 %v1436_v32 }
 0x14f   :  { %1091 = vmatpush2.bf16.msra.mxu0 %v1434_v33 }
 0x1d2   :  { %v804_v34 = vpop.f32.mrf.mxu0 }
 0x1d3   :  { %v805_v43 = vadd.f32 %v804_v34, %v443_v41 }
 0x1d4   :  { %v806_v35 = vpop.f32.mrf.mxu0 }
 0x1d5   :  { %v807_v45 = vadd.f32 %v806_v35, %v447_v42 }
 0x1d6   :  { %v808_v36 = vpop.f32.mrf.mxu0 }
 0x1d8   :  { %v809_v37 = vpop.f32.mrf.mxu0 }
 0x1f2   :  { %v845_v44 = vpop.f32.mrf.mxu1 }
 0x1f3   :  { %v846_v46 = vadd.f32 %v845_v44, %v805_v43 }
 0x1f4   :  { %v847_v47 = vpop.f32.mrf.mxu1 }
 0x1f5   :  { %v848_v48 = vadd.f32 %v847_v47, %v807_v45  ;;  %v852_v49 = vmax.f32 %v846_v46, 0.0 }
 0x1f6   :  { %v849_v50 = vpop.f32.mrf.mxu1 }
 0x1f7   :  { %v853_v51 = vmax.f32 %v848_v48, 0.0  ;;  %v854_v54 = vpack.c.bf16 %v852_v49, %v852_v49 }
 0x1f8   :  { %v850_v52 = vpop.f32.mrf.mxu1 }
 0x1f9   :  { %v855_v53 = vpack.c.bf16 %v853_v51, %v853_v51 }
 0x1fb   :  { %1092 = vmatprep.mubr.bf16.mxu0 %v855_v53 }
 0x1fc   :  { %1093 = vmatmul.mubr.bf16.vlgmr.msra.gmra.mxu0 %v854_v54 }
 0x2bc   :  { %v1094_v58 = vpop.f32.mrf.mxu0 }
 0x2bd   :  { %v1095_v59 = vadd.f32 %v1094_v58, %v893_v56 }
 0x2be   :  { %v1096_v60 = vpop.f32.mrf.mxu0 }
 0x2bf   :  { %1101 = vst [vmem:[%s1597_s7] sm:$0xff] %v1095_v59  ;;  %v1097_v61 = vadd.f32 %v1096_v60, %v897_v57 }
 0x2c0   :  { %v1098_v62 = vpop.f32.mrf.mxu0 }
 0x2c1   :  { %1102 = vst [vmem:[%s1597_s7 + $0x8] sm:$0xff] %v1097_v61 }
 0x2c2   :  { %v1099_v63 = vpop.f32.mrf.mxu0 }
 0x2c3   :  { %1107 = vsyncpa [#allocation3], 1 }
 0x2c4   :  { %1108 = vsyncpa [#allocation5], 1 }

// kernel: _forward_padded.1
= control target key start
LH: loop header
LB: loop body
LE: loop exit
PB: predicated region body
PF: predicated region fallthrough
CT: control target
= control target key end

     0   :  { %12 = vsyncpa [#allocation3], 0  ;;  %s1590_s0 = inlined_call_operand.vmem [shape: f32[8,128], index: 0, kind: input, shape index: {}]   ;;  %s1591_s1 = inlined_call_operand.hbm [shape: bf16[128,512], index: 1, kind: input, shape index: {}]   ;;  %s1592_s2 = inlined_call_operand.vmem [shape: f32[1,512], index: 2, kind: input, shape index: {}]   ;;  %s1593_s3 = inlined_call_operand.hbm [shape: bf16[512,256], index: 3, kind: input, shape index: {}]   ;;  %s1594_s4 = inlined_call_operand.vmem [shape: f32[1,256], index: 4, kind: input, shape index: {}]   ;;  %s1595_s5 = inlined_call_operand.hbm [shape: bf16[256,256], index: 5, kind: input, shape index: {}]   ;;  %s1596_s6 = inlined_call_operand.vmem [shape: f32[1,256], index: 6, kind: input, shape index: {}]   ;;  %s1597_s7 = inlined_call_operand.vmem [shape: f32[8,256], index: 7, kind: output, shape index: {}]  }
   0x1   :  { %13 = vsyncpa [#allocation5], 0  ;;  %s1501_s24 = smov [#allocation4]  }
   0x2   :  { %s35_s25 = sshll.u32 %s1501_s24, 4  ;;  %s36_s25 = int_to_ptr.vmem [resolvable:$true] %s35_s25 }
   0x3   :  { %s1445_s26 = scalar_lea.vmem %s36_s25, 8192  ;;  %p1450_p1 = scmp.lt.s32.totalorder %s36_s25, %s36_s25 }
   0x4   :  { %p1446_p0 = scmp.ne.s32.totalorder %s36_s25, %s1445_s26  ;;  %p1451_p2 = scmp.lt.s32.totalorder %s1445_s26, %s1445_s26 }
   0x6   :  { %p1452_p3 = por %p1451_p2, %p1450_p1 }
   0x8   :  { %p1453_p4 = pnand %p1452_p3, %p1446_p0 }
   0xa   :  { %1456 = shalt.err (!%p1453_p4)
}
   0xb   :  { %s1502_s27 = smov 128   ;;  %s1503_s28 = smov 8  }
   0xc   :  { %41 = dma.hbm_to_vmem [thread:$0]  %s1593_s3, 8192, %s36_s25, [#allocation5], %s1502_s27, %s1502_s27, %s1503_s28  }
   0xd   :  { %s1504_s8 = smov [#allocation2]  }
   0xe   :  { %s21_s9 = sshll.u32 %s1504_s8, 4  ;;  %s22_s9 = int_to_ptr.vmem [resolvable:$true] %s21_s9 }
   0xf   :  { %s1465_s10 = scalar_lea.vmem %s22_s9, 4096  ;;  %p1470_p6 = scmp.lt.s32.totalorder %s22_s9, %s22_s9 }
  0x10   :  { %p1466_p5 = scmp.ne.s32.totalorder %s22_s9, %s1465_s10  ;;  %p1471_p7 = scmp.lt.s32.totalorder %s1465_s10, %s1465_s10 }
  0x12   :  { %p1472_p8 = por %p1471_p7, %p1470_p6 }
  0x14   :  { %p1473_p9 = pnand %p1472_p8, %p1466_p5 }
  0x16   :  { %1476 = shalt.err (!%p1473_p9)
}
  0x17   :  { %s1505_s11 = smov 256   ;;  %s1506_s12 = smov 16  }
  0x18   :  { %27 = dma.hbm_to_vmem [thread:$0]  %s1591_s1, 4096, %s22_s9, [#allocation3], %s1505_s11, %s1505_s11, %s1506_s12  }
  0x19   :  { %s1507_s15 = smov [#allocation6]  }
  0x1a   :  { %s49_s16 = sshll.u32 %s1507_s15, 4  ;;  %s50_s16 = int_to_ptr.vmem [resolvable:$true] %s49_s16 }
  0x1b   :  { %s1485_s3 = scalar_lea.vmem %s50_s16, 4096  ;;  %p1490_p11 = scmp.lt.s32.totalorder %s50_s16, %s50_s16 }
  0x1c   :  { %p1486_p10 = scmp.ne.s32.totalorder %s50_s16, %s1485_s3  ;;  %p1491_p12 = scmp.lt.s32.totalorder %s1485_s3, %s1485_s3 }
  0x1e   :  { %p1492_p13 = por %p1491_p12, %p1490_p11 }
  0x20   :  { %p1493_p0 = pnand %p1492_p13, %p1486_p10 }
  0x22   :  { %1496 = shalt.err (!%p1493_p0)
}
  0x23   :  { %55 = dma.hbm_to_vmem [thread:$0]  %s1595_s5, 4096, %s50_s16, [#allocation5], %s1502_s27, %s1502_s27, %s1503_s28  }
  0x24   :  { %1497 = dma.done.wait [#allocation3], 4096  }
  0x25   :  { %1498 = vsyncadd [#allocation3], 4294963200 }
  0x26   :  { %1499 = dma.done.wait [#allocation5], 12288  }
  0x27   :  { %1500 = vsyncadd [#allocation5], 4294955008  ;;  %v1508_v0 = vmov 0   ;;  %v1245_v1 = vld [vmem:[#allocation2 + $0xe4] ss:$16 sps:$4 sm:$0xff]  }
  0x28   :  { %316 = vmatprep.mubr.bf16.mxu1 %v1508_v0  ;;  %v1247_v2 = vld [vmem:[#allocation2 + $0xe0] ss:$16 sps:$4 sm:$0xff]   ;;  %284 = vmatprep.subr.bf16.mxu1 %v1245_v1  ;;  %v1248_v3 = vld [vmem:[#allocation2 + $0xc4] ss:$16 sps:$4 sm:$0xff]   ;;  %v1271_v23 = vld [vmem:[#allocation2 + $0xec] ss:$16 sps:$4 sm:$0xff]  }
  0x29   :  { %285 = vmatpush1.bf16.msra.mxu1 %v1247_v2  ;;  %v1250_v4 = vld [vmem:[#allocation2 + $0xc0] ss:$16 sps:$4 sm:$0xff]   ;;  %v1251_v5 = vld [vmem:[#allocation2 + $0xa4] ss:$16 sps:$4 sm:$0xff]   ;;  %v1269_v27 = vld [vmem:[#allocation2 + $0xe8] ss:$16 sps:$4 sm:$0xff]  }
  0x2a   :  { %286 = vmatprep.subr.bf16.mxu1 %v1248_v3  ;;  %v1253_v6 = vld [vmem:[#allocation2 + $0xa0] ss:$16 sps:$4 sm:$0xff]   ;;  %v1254_v7 = vld [vmem:[#allocation2 + $0x84] ss:$16 sps:$4 sm:$0xff]   ;;  %v1274_v28 = vld [vmem:[#allocation2 + $0xcc] ss:$16 sps:$4 sm:$0xff]  }
  0x2b   :  { %v1256_v8 = vld [vmem:[#allocation2 + $0x80] ss:$16 sps:$4 sm:$0xff]   ;;  %v1257_v9 = vld [vmem:[#allocation2 + $0x64] ss:$16 sps:$4 sm:$0xff]   ;;  %v1272_v31 = vld [vmem:[#allocation2 + $0xc8] ss:$16 sps:$4 sm:$0xff]  }
  0x2c   :  { %v1259_v10 = vld [vmem:[#allocation2 + $0x60] ss:$16 sps:$4 sm:$0xff]   ;;  %v1260_v11 = vld [vmem:[#allocation2 + $0x44] ss:$16 sps:$4 sm:$0xff]   ;;  %v1277_v32 = vld [vmem:[#allocation2 + $0xac] ss:$16 sps:$4 sm:$0xff]  }
  0x2d   :  { %287 = vmatpush1.bf16.msra.mxu1 %v1250_v4  ;;  %v1262_v12 = vld [vmem:[#allocation2 + $0x40] ss:$16 sps:$4 sm:$0xff]   ;;  %v1263_v13 = vld [vmem:[#allocation2 + $0x24] ss:$16 sps:$4 sm:$0xff]   ;;  %v1275_v35 = vld [vmem:[#allocation2 + $0xa8] ss:$16 sps:$4 sm:$0xff]  }
  0x2e   :  { %288 = vmatprep.subr.bf16.mxu1 %v1251_v5  ;;  %v1265_v14 = vld [vmem:[#allocation2 + $0x20] ss:$16 sps:$4 sm:$0xff]   ;;  %v1293_v15 = vld [vmem:[#allocation4 + $0x74] ss:$8 sps:$4 sm:$0xff]   ;;  %v1296_v17 = vld [vmem:[#allocation4 + $0x64] ss:$8 sps:$4 sm:$0xff]  }
  0x2f   :  { %v1295_v16 = vld [vmem:[#allocation4 + $0x70] ss:$8 sps:$4 sm:$0xff]   ;;  %v1266_v18 = vld [vmem:[#allocation2 + $0x4] ss:$16 sps:$4 sm:$0xff]   ;;  %770 = vmatprep.subr.bf16.mxu0 %v1293_v15  ;;  %v1298_v19 = vld [vmem:[#allocation4 + $0x60] ss:$8 sps:$4 sm:$0xff]  }
  0x30   :  { %771 = vmatpush1.bf16.msra.mxu0 %v1295_v16  ;;  %v1268_v20 = vld [vmem:[#allocation2] ss:$16 sps:$4 sm:$0xff]   ;;  %v1299_v21 = vld [vmem:[#allocation4 + $0x54] ss:$8 sps:$4 sm:$0xff]   ;;  %v1302_v26 = vld [vmem:[#allocation4 + $0x44] ss:$8 sps:$4 sm:$0xff]  }
  0x31   :  { %289 = vmatpush1.bf16.msra.mxu1 %v1253_v6  ;;  %772 = vmatprep.subr.bf16.mxu0 %v1296_v17  ;;  %v68_v22 = vld [vmem:[%s1590_s0] sm:$0xff]  ;;  %v1301_v24 = vld [vmem:[#allocation4 + $0x50] ss:$8 sps:$4 sm:$0xff]   ;;  %v1305_v30 = vld [vmem:[#allocation4 + $0x34] ss:$8 sps:$4 sm:$0xff]  }
  0x32   :  { %290 = vmatprep.subr.bf16.mxu1 %v1254_v7  ;;  %v1561_v25 = vpack.c.bf16 %v68_v22, %v68_v22  ;;  %v1304_v29 = vld [vmem:[#allocation4 + $0x40] ss:$8 sps:$4 sm:$0xff]   ;;  %v1307_v33 = vld [vmem:[#allocation4 + $0x30] ss:$8 sps:$4 sm:$0xff]   ;;  %v1308_v34 = vld [vmem:[#allocation4 + $0x24] ss:$8 sps:$4 sm:$0xff]  }
  0x33   :  { %v1280_v36 = vld [vmem:[#allocation2 + $0x8c] ss:$16 sps:$4 sm:$0xff]   ;;  %v1310_v37 = vld [vmem:[#allocation4 + $0x20] ss:$8 sps:$4 sm:$0xff]   ;;  %v1313_v41 = vld [vmem:[#allocation4 + $0x10] ss:$8 sps:$4 sm:$0xff]  }
  0x34   :  { %773 = vmatpush1.bf16.msra.mxu0 %v1298_v19  ;;  %v1311_v38 = vld [vmem:[#allocation4 + $0x14] ss:$8 sps:$4 sm:$0xff]   ;;  %v1278_v39 = vld [vmem:[#allocation2 + $0x88] ss:$16 sps:$4 sm:$0xff]   ;;  %v1314_v42 = vld [vmem:[#allocation4 + $0x4] ss:$8 sps:$4 sm:$0xff]  }
  0x35   :  { %291 = vmatpush1.bf16.msra.mxu1 %v1256_v8  ;;  %774 = vmatprep.subr.bf16.mxu0 %v1299_v21  ;;  %v1283_v40 = vld [vmem:[#allocation2 + $0x6c] ss:$16 sps:$4 sm:$0xff]   ;;  %v1281_v43 = vld [vmem:[#allocation2 + $0x68] ss:$16 sps:$4 sm:$0xff]  }
  0x36   :  { %292 = vmatprep.subr.bf16.mxu1 %v1257_v9  ;;  %v1286_v44 = vld [vmem:[#allocation2 + $0x4c] ss:$16 sps:$4 sm:$0xff]   ;;  %v1316_v45 = vld [vmem:[#allocation4] ss:$8 sps:$4 sm:$0xff]   ;;  %v1322_v49 = vld [vmem:[#allocation4 + $0xf0] ss:$8 sps:$4 sm:$0xff]  }
  0x37   :  { %v1317_v46 = vld [vmem:[#allocation4 + $0xf4] ss:$8 sps:$4 sm:$0xff]   ;;  %v1284_v47 = vld [vmem:[#allocation2 + $0x48] ss:$16 sps:$4 sm:$0xff]   ;;  %v1323_v50 = vld [vmem:[#allocation4 + $0xe4] ss:$8 sps:$4 sm:$0xff]  }
  0x38   :  { %775 = vmatpush1.bf16.msra.mxu0 %v1301_v24  ;;  %v1289_v48 = vld [vmem:[#allocation2 + $0x2c] ss:$16 sps:$4 sm:$0xff]   ;;  %v1287_v51 = vld [vmem:[#allocation2 + $0x28] ss:$16 sps:$4 sm:$0xff]  }
  0x39   :  { %293 = vmatpush1.bf16.msra.mxu1 %v1259_v10  ;;  %776 = vmatprep.subr.bf16.mxu0 %v1302_v26  ;;  %v1292_v52 = vld [vmem:[#allocation2 + $0xc] ss:$16 sps:$4 sm:$0xff]   ;;  %v1328_v53 = vld [vmem:[#allocation4 + $0xe0] ss:$8 sps:$4 sm:$0xff]   ;;  %v1334_v57 = vld [vmem:[#allocation4 + $0xd0] ss:$8 sps:$4 sm:$0xff]  }
  0x3a   :  { %294 = vmatprep.subr.bf16.mxu1 %v1260_v11  ;;  %v1329_v54 = vld [vmem:[#allocation4 + $0xd4] ss:$8 sps:$4 sm:$0xff]   ;;  %v1290_v55 = vld [vmem:[#allocation2 + $0x8] ss:$16 sps:$4 sm:$0xff]   ;;  %v1335_v58 = vld [vmem:[#allocation4 + $0xc4] ss:$8 sps:$4 sm:$0xff]  }
  0x3b   :  { %v1321_v56 = vld [vmem:[#allocation4 + $0x174] ss:$8 sps:$4 sm:$0xff]   ;;  %v1319_v59 = vld [vmem:[#allocation4 + $0x170] ss:$8 sps:$4 sm:$0xff]   ;;  %v1327_v60 = vld [vmem:[#allocation4 + $0x164] ss:$8 sps:$4 sm:$0xff]  }
  0x3c   :  { %777 = vmatpush1.bf16.msra.mxu0 %v1304_v29  ;;  %v1340_v61 = vld [vmem:[#allocation4 + $0xc0] ss:$8 sps:$4 sm:$0xff]   ;;  %v1341_v62 = vld [vmem:[#allocation4 + $0xb4] ss:$8 sps:$4 sm:$0xff]   ;;  %v1346_v1 = vld [vmem:[#allocation4 + $0xb0] ss:$8 sps:$4 sm:$0xff]  }
  0x3d   :  { %295 = vmatpush1.bf16.msra.mxu1 %v1262_v12  ;;  %778 = vmatprep.subr.bf16.mxu0 %v1305_v30  ;;  %v1325_v63 = vld [vmem:[#allocation4 + $0x160] ss:$8 sps:$4 sm:$0xff]   ;;  %v1347_v2 = vld [vmem:[#allocation4 + $0xa4] ss:$8 sps:$4 sm:$0xff]   ;;  %v1331_v3 = vld [vmem:[#allocation4 + $0x150] ss:$8 sps:$4 sm:$0xff]  }
  0x3e   :  { %296 = vmatprep.subr.bf16.mxu1 %v1263_v13  ;;  %v1339_v4 = vld [vmem:[#allocation4 + $0x144] ss:$8 sps:$4 sm:$0xff]   ;;  %v1352_v5 = vld [vmem:[#allocation4 + $0xa0] ss:$8 sps:$4 sm:$0xff]   ;;  %v1345_v7 = vld [vmem:[#allocation4 + $0x134] ss:$8 sps:$4 sm:$0xff]  }
  0x3f   :  { %v1337_v6 = vld [vmem:[#allocation4 + $0x140] ss:$8 sps:$4 sm:$0xff]   ;;  %v1343_v8 = vld [vmem:[#allocation4 + $0x130] ss:$8 sps:$4 sm:$0xff]   ;;  %v1351_v9 = vld [vmem:[#allocation4 + $0x124] ss:$8 sps:$4 sm:$0xff]  }
  0x40   :  { %779 = vmatpush1.bf16.msra.mxu0 %v1307_v33  ;;  %v1349_v10 = vld [vmem:[#allocation4 + $0x120] ss:$8 sps:$4 sm:$0xff]   ;;  %v1353_v11 = vld [vmem:[#allocation4 + $0x94] ss:$8 sps:$4 sm:$0xff]   ;;  %v1355_v13 = vld [vmem:[#allocation4 + $0x110] ss:$8 sps:$4 sm:$0xff]  }
  0x41   :  { %297 = vmatpush1.bf16.msra.mxu1 %v1265_v14  ;;  %780 = vmatprep.subr.bf16.mxu0 %v1308_v34  ;;  %v1357_v12 = vld [vmem:[#allocation4 + $0x114] ss:$8 sps:$4 sm:$0xff]   ;;  %v1358_v14 = vld [vmem:[#allocation4 + $0x90] ss:$8 sps:$4 sm:$0xff]   ;;  %v1359_v15 = vld [vmem:[#allocation4 + $0x84] ss:$8 sps:$4 sm:$0xff]  }
  0x42   :  { %298 = vmatprep.subr.bf16.mxu1 %v1266_v18  ;;  %v1363_v16 = vld [vmem:[#allocation4 + $0x104] ss:$8 sps:$4 sm:$0xff]   ;;  %v1361_v17 = vld [vmem:[#allocation4 + $0x100] ss:$8 sps:$4 sm:$0xff]   ;;  %v1367_v19 = vld [vmem:[#allocation4 + $0x1f4] ss:$8 sps:$4 sm:$0xff]  }
  0x43   :  { %v1364_v18 = vld [vmem:[#allocation4 + $0x80] ss:$8 sps:$4 sm:$0xff]   ;;  %v1370_v21 = vld [vmem:[#allocation4 + $0x1e4] ss:$8 sps:$4 sm:$0xff]   ;;  %v1371_v24 = vld [vmem:[#allocation4 + $0x1d0] ss:$8 sps:$4 sm:$0xff]  }
  0x44   :  { %781 = vmatpush1.bf16.msra.mxu0 %v1310_v37  ;;  %v1368_v22 = vld [vmem:[#allocation4 + $0x1e0] ss:$8 sps:$4 sm:$0xff]   ;;  %v1382_v29 = vld [vmem:[#allocation4 + $0x1a4] ss:$8 sps:$4 sm:$0xff]  }
  0x45   :  { %299 = vmatpush1.bf16.msra.mxu1 %v1268_v20  ;;  %782 = vmatprep.subr.bf16.mxu0 %v1311_v38  ;;  %v1365_v20 = vld [vmem:[#allocation4 + $0x1f0] ss:$8 sps:$4 sm:$0xff]   ;;  %v1374_v26 = vld [vmem:[#allocation4 + $0x1c0] ss:$8 sps:$4 sm:$0xff]   ;;  %v1388_v33 = vld [vmem:[#allocation4 + $0x184] ss:$8 sps:$4 sm:$0xff]  }
  0x46   :  { %325 = vmatprep.subr.bf16.mxu1 %v1271_v23  ;;  %v1373_v23 = vld [vmem:[#allocation4 + $0x1d4] ss:$8 sps:$4 sm:$0xff]   ;;  %v1380_v30 = vld [vmem:[#allocation4 + $0x1a0] ss:$8 sps:$4 sm:$0xff]  }
  0x47   :  { %v1386_v34 = vld [vmem:[#allocation4 + $0x180] ss:$8 sps:$4 sm:$0xff]  }
  0x48   :  { %317 = vmatmul.mubr.bf16.vlgmr.msra.gmra.mxu1 %v1561_v25  ;;  %783 = vmatpush1.bf16.msra.mxu0 %v1313_v41 }
  0x49   :  { %326 = vmatpush1.bf16.msra.mxu1 %v1269_v27  ;;  %357 = vmatprep.mubr.bf16.mxu1 %v1508_v0  ;;  %v1333_v0 = vld [vmem:[#allocation4 + $0x154] ss:$8 sps:$4 sm:$0xff]  }
  0x4a   :  { %327 = vmatprep.subr.bf16.mxu1 %v1274_v28  ;;  %784 = vmatprep.subr.bf16.mxu0 %v1314_v42  ;;  %v1379_v27 = vld [vmem:[#allocation4 + $0x1b4] ss:$8 sps:$4 sm:$0xff]   ;;  %v1377_v28 = vld [vmem:[#allocation4 + $0x1b0] ss:$8 sps:$4 sm:$0xff]  }
  0x4c   :  { %785 = vmatpush1.bf16.msra.mxu0 %v1316_v45 }
  0x4d   :  { %328 = vmatpush1.bf16.msra.mxu1 %v1272_v31  ;;  %786 = vmatprep.subr.bf16.mxu0 %v1317_v46  ;;  %v1385_v31 = vld [vmem:[#allocation4 + $0x194] ss:$8 sps:$4 sm:$0xff]  }
  0x4e   :  { %329 = vmatprep.subr.bf16.mxu1 %v1277_v32  ;;  %v1383_v32 = vld [vmem:[#allocation4 + $0x190] ss:$8 sps:$4 sm:$0xff]  }
  0x50   :  { %787 = vmatpush2.bf16.msra.mxu0 %v1322_v49 }
  0x51   :  { %330 = vmatpush1.bf16.msra.mxu1 %v1275_v35  ;;  %788 = vmatprep.subr.bf16.mxu0 %v1323_v50  ;;  %v1391_v35 = vld [vmem:[#allocation6 + $0x74] ss:$8 sps:$4 sm:$0xff]  }
  0x52   :  { %331 = vmatprep.subr.bf16.mxu1 %v1280_v36  ;;  %v104_v36 = vlaneseq }
  0x54   :  { %789 = vmatpush2.bf16.msra.mxu0 %v1328_v53  ;;  %v105_v37 = vshrl.u32 %v104_v36, 7 }
  0x55   :  { %332 = vmatpush1.bf16.msra.mxu1 %v1278_v39  ;;  %790 = vmatprep.subr.bf16.mxu0 %v1329_v54  ;;  %v102_v39 = vld [vmem:[%s1592_s2] sm:$0xf]  ;;  %v1394_v54 = vld [vmem:[#allocation6 + $0x64] ss:$8 sps:$4 sm:$0xff]  }
  0x56   :  { %333 = vmatprep.subr.bf16.mxu1 %v1283_v40  ;;  %v1565_v38 = vsub.s32 0, %v105_v37  ;;  %v1570_v40 = vsub.s32 1, %v105_v37 }
  0x58   :  { %791 = vmatpush2.bf16.msra.mxu0 %v1334_v57  ;;  %v107_v41 = vrot.slane %v102_v39, %v1565_v38  ;;  %v111_v42 = vrot.slane %v102_v39, %v1570_v40  ;;  %v1395_v57 = vld [vmem:[#allocation6 + $0x50] ss:$8 sps:$4 sm:$0xff]  }
  0x59   :  { %334 = vmatpush1.bf16.msra.mxu1 %v1281_v43  ;;  %792 = vmatprep.subr.bf16.mxu0 %v1335_v58  ;;  %v1400_v58 = vld [vmem:[#allocation6 + $0x44] ss:$8 sps:$4 sm:$0xff]  }
  0x5a   :  { %335 = vmatprep.subr.bf16.mxu1 %v1286_v44 }
  0x5c   :  { %793 = vmatpush2.bf16.msra.mxu0 %v1340_v61  ;;  %v1401_v61 = vld [vmem:[#allocation6 + $0x30] ss:$8 sps:$4 sm:$0xff]  }
  0x5d   :  { %336 = vmatpush1.bf16.msra.mxu1 %v1284_v47  ;;  %794 = vmatprep.subr.bf16.mxu0 %v1341_v62  ;;  %v1406_v62 = vld [vmem:[#allocation6 + $0x24] ss:$8 sps:$4 sm:$0xff]  }
  0x5e   :  { %337 = vmatprep.subr.bf16.mxu1 %v1289_v48 }
  0x60   :  { %795 = vmatpush2.bf16.msra.mxu0 %v1346_v1  ;;  %v1404_v1 = vld [vmem:[#allocation6 + $0x20] ss:$8 sps:$4 sm:$0xff]  }
  0x61   :  { %338 = vmatpush1.bf16.msra.mxu1 %v1287_v51  ;;  %796 = vmatprep.subr.bf16.mxu0 %v1347_v2 }
  0x62   :  { %339 = vmatprep.subr.bf16.mxu1 %v1292_v52  ;;  %v1389_v52 = vld [vmem:[#allocation6 + $0x70] ss:$8 sps:$4 sm:$0xff]  }
  0x64   :  { %797 = vmatpush2.bf16.msra.mxu0 %v1352_v5 }
  0x65   :  { %340 = vmatpush1.bf16.msra.mxu1 %v1290_v55  ;;  %798 = vmatprep.subr.bf16.mxu0 %v1353_v11  ;;  %v1392_v55 = vld [vmem:[#allocation6 + $0x60] ss:$8 sps:$4 sm:$0xff]  }
  0x66   :  { %811 = vmatprep.subr.bf16.mxu1 %v1321_v56  ;;  %v1397_v56 = vld [vmem:[#allocation6 + $0x54] ss:$8 sps:$4 sm:$0xff]  }
  0x68   :  { %358 = vmatmul.mubr.bf16.vlgmr.msra.gmra.mxu1 %v1561_v25  ;;  %799 = vmatpush2.bf16.msra.mxu0 %v1358_v14  ;;  %v1376_v25 = vld [vmem:[#allocation4 + $0x1c4] ss:$8 sps:$4 sm:$0xff]   ;;  %v1409_v14 = vld [vmem:[#allocation6 + $0x14] ss:$8 sps:$4 sm:$0xff]  }
  0x69   :  { %812 = vmatpush1.bf16.msra.mxu1 %v1319_v59  ;;  %800 = vmatprep.subr.bf16.mxu0 %v1359_v15  ;;  %v1398_v59 = vld [vmem:[#allocation6 + $0x40] ss:$8 sps:$4 sm:$0xff]   ;;  %v1407_v15 = vld [vmem:[#allocation6 + $0x10] ss:$8 sps:$4 sm:$0xff]  }
  0x6a   :  { %813 = vmatprep.subr.bf16.mxu1 %v1327_v60  ;;  %v1403_v60 = vld [vmem:[#allocation6 + $0x34] ss:$8 sps:$4 sm:$0xff]  }
  0x6c   :  { %801 = vmatpush2.bf16.msra.mxu0 %v1364_v18  ;;  %v1415_v18 = vld [vmem:[#allocation6 + $0xf4] ss:$8 sps:$4 sm:$0xff]  }
  0x6d   :  { %814 = vmatpush1.bf16.msra.mxu1 %v1325_v63  ;;  %1060 = vmatprep.subr.bf16.mxu0 %v1391_v35  ;;  %v114_v63 = vsub.s32 2, %v105_v37 }
  0x6e   :  { %815 = vmatprep.subr.bf16.mxu1 %v1333_v0  ;;  %v118_v0 = vsub.s32 3, %v105_v37 }
  0x6f   :  { %v115_v2 = vrot.slane %v102_v39, %v114_v63 }
  0x71   :  { %816 = vmatpush1.bf16.msra.mxu1 %v1331_v3  ;;  %v119_v3 = vrot.slane %v102_v39, %v118_v0  ;;  %v438_v39 = vld [vmem:[%s1594_s4] sm:$0x3] }
  0x72   :  { %817 = vmatprep.subr.bf16.mxu1 %v1339_v4 }
  0x75   :  { %818 = vmatpush1.bf16.msra.mxu1 %v1337_v6 }
  0x76   :  { %819 = vmatprep.subr.bf16.mxu1 %v1345_v7 }
  0x79   :  { %820 = vmatpush1.bf16.msra.mxu1 %v1343_v8 }
  0x7a   :  { %821 = vmatprep.subr.bf16.mxu1 %v1351_v9 }
  0x7d   :  { %822 = vmatpush1.bf16.msra.mxu1 %v1349_v10 }
  0x7e   :  { %823 = vmatprep.subr.bf16.mxu1 %v1357_v12 }
  0x81   :  { %824 = vmatpush1.bf16.msra.mxu1 %v1355_v13 }
  0x82   :  { %825 = vmatprep.subr.bf16.mxu1 %v1363_v16  ;;  %v1412_v16 = vld [vmem:[#allocation6 + $0x4] ss:$8 sps:$4 sm:$0xff]  }
  0x85   :  { %826 = vmatpush1.bf16.msra.mxu1 %v1361_v17  ;;  %v1410_v17 = vld [vmem:[#allocation6] ss:$8 sps:$4 sm:$0xff]  }
  0x86   :  { %827 = vmatprep.subr.bf16.mxu1 %v1367_v19  ;;  %v1413_v19 = vld [vmem:[#allocation6 + $0xf0] ss:$8 sps:$4 sm:$0xff]  }
  0x89   :  { %828 = vmatpush2.bf16.msra.mxu1 %v1365_v20  ;;  %v1418_v20 = vld [vmem:[#allocation6 + $0xe4] ss:$8 sps:$4 sm:$0xff]  }
  0x8a   :  { %829 = vmatprep.subr.bf16.mxu1 %v1370_v21  ;;  %v1416_v21 = vld [vmem:[#allocation6 + $0xe0] ss:$8 sps:$4 sm:$0xff]  }
  0x8d   :  { %830 = vmatpush2.bf16.msra.mxu1 %v1368_v22  ;;  %v1421_v22 = vld [vmem:[#allocation6 + $0xd4] ss:$8 sps:$4 sm:$0xff]  }
  0x8e   :  { %831 = vmatprep.subr.bf16.mxu1 %v1373_v23  ;;  %v1419_v23 = vld [vmem:[#allocation6 + $0xd0] ss:$8 sps:$4 sm:$0xff]  }
  0x91   :  { %832 = vmatpush2.bf16.msra.mxu1 %v1371_v24  ;;  %v1424_v24 = vld [vmem:[#allocation6 + $0xc4] ss:$8 sps:$4 sm:$0xff]  }
  0x92   :  { %833 = vmatprep.subr.bf16.mxu1 %v1376_v25  ;;  %v1422_v25 = vld [vmem:[#allocation6 + $0xc0] ss:$8 sps:$4 sm:$0xff]  }
  0x95   :  { %834 = vmatpush2.bf16.msra.mxu1 %v1374_v26  ;;  %v1427_v26 = vld [vmem:[#allocation6 + $0xb4] ss:$8 sps:$4 sm:$0xff]  }
  0x96   :  { %835 = vmatprep.subr.bf16.mxu1 %v1379_v27  ;;  %v1425_v27 = vld [vmem:[#allocation6 + $0xb0] ss:$8 sps:$4 sm:$0xff]  }
  0x99   :  { %836 = vmatpush2.bf16.msra.mxu1 %v1377_v28  ;;  %v1430_v28 = vld [vmem:[#allocation6 + $0xa4] ss:$8 sps:$4 sm:$0xff]  }
  0x9a   :  { %837 = vmatprep.subr.bf16.mxu1 %v1382_v29  ;;  %v1428_v29 = vld [vmem:[#allocation6 + $0xa0] ss:$8 sps:$4 sm:$0xff]  }
  0x9d   :  { %838 = vmatpush2.bf16.msra.mxu1 %v1380_v30  ;;  %v1433_v30 = vld [vmem:[#allocation6 + $0x94] ss:$8 sps:$4 sm:$0xff]  }
  0x9e   :  { %839 = vmatprep.subr.bf16.mxu1 %v1385_v31  ;;  %v1431_v31 = vld [vmem:[#allocation6 + $0x90] ss:$8 sps:$4 sm:$0xff]  }
  0xa1   :  { %840 = vmatpush2.bf16.msra.mxu1 %v1383_v32  ;;  %v1436_v32 = vld [vmem:[#allocation6 + $0x84] ss:$8 sps:$4 sm:$0xff]  }
  0xa2   :  { %841 = vmatprep.subr.bf16.mxu1 %v1388_v33  ;;  %v1434_v33 = vld [vmem:[#allocation6 + $0x80] ss:$8 sps:$4 sm:$0xff]  }
  0xa5   :  { %842 = vmatpush2.bf16.msra.mxu1 %v1386_v34 }
 0x108   :  { %v318_v43 = vpop.f32.mrf.mxu1 }
 0x109   :  { %v319_v44 = vadd.f32 %v318_v43, %v107_v41  ;;  %v443_v41 = vrot.slane %v438_v39, %v1565_v38 }
 0x10a   :  { %v320_v45 = vpop.f32.mrf.mxu1 }
 0x10b   :  { %v321_v46 = vadd.f32 %v320_v45, %v111_v42  ;;  %v366_v47 = vmax.f32 %v319_v44, 0.0  ;;  %v447_v42 = vrot.slane %v438_v39, %v1570_v40 }
 0x10c   :  { %v322_v48 = vpop.f32.mrf.mxu1 }
 0x10d   :  { %v367_v49 = vmax.f32 %v321_v46, 0.0  ;;  %v370_v53 = vpack.c.bf16 %v366_v47, %v366_v47 }
 0x10e   :  { %v323_v50 = vpop.f32.mrf.mxu1 }
 0x10f   :  { %v371_v51 = vpack.c.bf16 %v367_v49, %v367_v49 }
 0x111   :  { %802 = vmatprep.mubr.bf16.mxu0 %v371_v51 }
 0x112   :  { %803 = vmatmul.mubr.bf16.vlgmr.msra.gmra.mxu0 %v370_v53 }
 0x113   :  { %1061 = vmatpush1.bf16.msra.mxu0 %v1389_v52 }
 0x114   :  { %1062 = vmatprep.subr.bf16.mxu0 %v1394_v54 }
 0x117   :  { %1063 = vmatpush1.bf16.msra.mxu0 %v1392_v55  ;;  %v888_v55 = vld [vmem:[%s1596_s6] sm:$0x3] }
 0x118   :  { %1064 = vmatprep.subr.bf16.mxu0 %v1397_v56  ;;  %v893_v56 = vrot.slane %v888_v55, %v1565_v38 }
 0x11b   :  { %1065 = vmatpush1.bf16.msra.mxu0 %v1395_v57  ;;  %v897_v57 = vrot.slane %v888_v55, %v1570_v40 }
 0x11c   :  { %1066 = vmatprep.subr.bf16.mxu0 %v1400_v58 }
 0x11f   :  { %1067 = vmatpush1.bf16.msra.mxu0 %v1398_v59 }
 0x120   :  { %1068 = vmatprep.subr.bf16.mxu0 %v1403_v60 }
 0x123   :  { %1069 = vmatpush1.bf16.msra.mxu0 %v1401_v61 }
 0x124   :  { %1070 = vmatprep.subr.bf16.mxu0 %v1406_v62 }
 0x127   :  { %1071 = vmatpush1.bf16.msra.mxu0 %v1404_v1 }
 0x128   :  { %v359_v4 = vpop.f32.mrf.mxu1  ;;  %1072 = vmatprep.subr.bf16.mxu0 %v1409_v14 }
 0x129   :  { %v360_v5 = vadd.f32 %v359_v4, %v115_v2 }
 0x12a   :  { %v361_v6 = vpop.f32.mrf.mxu1 }
 0x12b   :  { %v362_v7 = vadd.f32 %v361_v6, %v119_v3  ;;  %v368_v8 = vmax.f32 %v360_v5, 0.0  ;;  %1073 = vmatpush1.bf16.msra.mxu0 %v1407_v15 }
 0x12c   :  { %v363_v9 = vpop.f32.mrf.mxu1  ;;  %1074 = vmatprep.subr.bf16.mxu0 %v1412_v16 }
 0x12d   :  { %v369_v10 = vmax.f32 %v362_v7, 0.0  ;;  %v372_v13 = vpack.c.bf16 %v368_v8, %v368_v8 }
 0x12e   :  { %v364_v11 = vpop.f32.mrf.mxu1 }
 0x12f   :  { %v373_v12 = vpack.c.bf16 %v369_v10, %v369_v10  ;;  %1075 = vmatpush1.bf16.msra.mxu0 %v1410_v17 }
 0x130   :  { %1076 = vmatprep.subr.bf16.mxu0 %v1415_v18 }
 0x131   :  { %843 = vmatprep.mubr.bf16.mxu1 %v373_v12 }
 0x132   :  { %844 = vmatmul.mubr.bf16.vlgmr.msra.gmra.mxu1 %v372_v13 }
 0x133   :  { %1077 = vmatpush2.bf16.msra.mxu0 %v1413_v19 }
 0x134   :  { %1078 = vmatprep.subr.bf16.mxu0 %v1418_v20 }
 0x137   :  { %1079 = vmatpush2.bf16.msra.mxu0 %v1416_v21 }
 0x138   :  { %1080 = vmatprep.subr.bf16.mxu0 %v1421_v22 }
 0x13b   :  { %1081 = vmatpush2.bf16.msra.mxu0 %v1419_v23 }
 0x13c   :  { %1082 = vmatprep.subr.bf16.mxu0 %v1424_v24 }
 0x13f   :  { %1083 = vmatpush2.bf16.msra.mxu0 %v1422_v25 }
 0x140   :  { %1084 = vmatprep.subr.bf16.mxu0 %v1427_v26 }
 0x143   :  { %1085 = vmatpush2.bf16.msra.mxu0 %v1425_v27 }
 0x144   :  { %1086 = vmatprep.subr.bf16.mxu0 %v1430_v28 }
 0x147   :  { %1087 = vmatpush2.bf16.msra.mxu0 %v1428_v29 }
 0x148   :  { %1088 = vmatprep.subr.bf16.mxu0 %v1433_v30 }
 0x14b   :  { %1089 = vmatpush2.bf16.msra.mxu0 %v1431_v31 }
 0x14c   :  { %1090 = vmatprep.subr.bf16.mxu0 %v1436_v32 }
 0x14f   :  { %1091 = vmatpush2.bf16.msra.mxu0 %v1434_v33 }
 0x1d2   :  { %v804_v34 = vpop.f32.mrf.mxu0 }
 0x1d3   :  { %v805_v43 = vadd.f32 %v804_v34, %v443_v41 }
 0x1d4   :  { %v806_v35 = vpop.f32.mrf.mxu0 }
 0x1d5   :  { %v807_v45 = vadd.f32 %v806_v35, %v447_v42 }
 0x1d6   :  { %v808_v36 = vpop.f32.mrf.mxu0 }
 0x1d8   :  { %v809_v37 = vpop.f32.mrf.mxu0 }
 0x1f2   :  { %v845_v44 = vpop.f32.mrf.mxu1 }
 0x1f3   :  { %v846_v46 = vadd.f32 %v845_v44, %v805_v43 }
 0x1f4   :  { %v847_v47 = vpop.f32.mrf.mxu1 }
 0x1f5   :  { %v848_v48 = vadd.f32 %v847_v47, %v807_v45  ;;  %v852_v49 = vmax.f32 %v846_v46, 0.0 }
 0x1f6   :  { %v849_v50 = vpop.f32.mrf.mxu1 }
 0x1f7   :  { %v853_v51 = vmax.f32 %v848_v48, 0.0  ;;  %v854_v54 = vpack.c.bf16 %v852_v49, %v852_v49 }
 0x1f8   :  { %v850_v52 = vpop.f32.mrf.mxu1 }
 0x1f9   :  { %v855_v53 = vpack.c.bf16 %v853_v51, %v853_v51 }
 0x1fb   :  { %1092 = vmatprep.mubr.bf16.mxu0 %v855_v53 }
 0x1fc   :  { %1093 = vmatmul.mubr.bf16.vlgmr.msra.gmra.mxu0 %v854_v54 }
 0x2bc   :  { %v1094_v58 = vpop.f32.mrf.mxu0 }
 0x2bd   :  { %v1095_v59 = vadd.f32 %v1094_v58, %v893_v56 }
 0x2be   :  { %v1096_v60 = vpop.f32.mrf.mxu0 }
 0x2bf   :  { %1101 = vst [vmem:[%s1597_s7] sm:$0xff] %v1095_v59  ;;  %v1097_v61 = vadd.f32 %v1096_v60, %v897_v57 }
 0x2c0   :  { %v1098_v62 = vpop.f32.mrf.mxu0 }
 0x2c1   :  { %1102 = vst [vmem:[%s1597_s7 + $0x8] sm:$0xff] %v1097_v61 }
 0x2c2   :  { %v1099_v63 = vpop.f32.mrf.mxu0 }
 0x2c3   :  { %1107 = vsyncpa [#allocation3], 1 }
 0x2c4   :  { %1108 = vsyncpa [#allocation5], 1 }

</bundles_post_ra>
